<compile_context>
chip_gen: v5e
topology: v5e:2x2
jax: 0.10.0
libtpu: 0.0.40
codegen_flags: <defaults>
</compile_context>

<pallas_src>
import numpy as np
import jax
import jax.numpy as jnp
from jax import lax
from jax.experimental import pallas as pl
from jax.experimental.pallas import tpu as pltpu


# ----------------------------------------------------------------------------
# Fused kernel: hoisted layer-0 projection + multi-layer GRU recurrence.
#
# Inputs (all full-array VMEM):
#   x_flat  : (S*B, F)  bf16   time-major, row-flattened input
#   w_ih0   : (F, 4H)   bf16   layer-0 input weights, columns [r | z | n | 0]
#   w_hh0   : (H, 4H)   bf16   layer-0 hidden weights, columns [r | z | 0 | n]
#   b0      : (1, 4H)   f32    [b_ir+b_hr | b_iz+b_hz | b_in | b_hn]
#   per upper layer l = 1..L-1:
#     w_l   : (2H, 4H)  bf16   rows 0:H input-side [r|z|n|0], rows H:2H
#                              hidden-side [r|z|0|n]
#     b_l   : (1, 4H)   f32    combined bias as above
# Output: final hidden state of the last layer, (B, H) f32
# Scratch: ih0 (S, B, 4H) f32  (hoisted projection, time-indexed in the loop)
#
# Gate math matches PyTorch nn.GRU (gate order r, z, n;
# n = tanh(ih_n + b_in + r * (hh_n + b_hn)); h0 = 0).
# ----------------------------------------------------------------------------
def make_fused_gru_kernel(num_layers, hidden_dim, seq_len, batch):
    H, S, B, L = hidden_dim, seq_len, batch, num_layers

    def kernel(*refs):
        x_ref, w_ih0_ref, w_hh0_ref, b0_ref = refs[0:4]
        upper_refs = refs[4:4 + 2 * (L - 1)]
        out_ref = refs[4 + 2 * (L - 1)]
        ih0_ref = refs[5 + 2 * (L - 1)]           # VMEM scratch (S, B, 4H)

        # ---- Hoisted layer-0 input projection: ONE lane-dense MXU op over all
        # S*B rows.  The full layer-0 bias is folded in here once, so the time
        # loop needs no per-step bias add for layer 0.
        ih0_flat = (
            jnp.dot(x_ref[...], w_ih0_ref[...], preferred_element_type=jnp.float32)
            + b0_ref[...]
        )                                          # (S*B, 4H) f32

        # Static (trace-time) redistribution (S*B,4H) -> (S,B,4H) scratch so the
        # recurrence indexes timesteps via a cheap leading-dim dynamic ref index.
        for t in range(S):
            ih0_ref[t] = ih0_flat[t * B:(t + 1) * B, :]

        # ---- Weights / biases loaded and broadcast ONCE before the time loop
        # (JAX does not CSE broadcast_in_dim; hoisting avoids S*L re-broadcasts).
        w_hh0 = w_hh0_ref[...]                                     # (H, 4H) bf16
        upper = []
        for l in range(L - 1):
            w_p = upper_refs[2 * l][...]                           # (2H, 4H) bf16
            b_bc = jnp.broadcast_to(upper_refs[2 * l + 1][...], (B, 4 * H))
            upper.append((w_p, b_bc))

        def gates(g, h):
            # g columns: [r_pre | z_pre | ih_n + b_in | hh_n + b_hn]  (4H = 128 lanes)
            r = jax.nn.sigmoid(g[:, 0 * H:1 * H])
            z = jax.nn.sigmoid(g[:, 1 * H:2 * H])
            n = jnp.tanh(g[:, 2 * H:3 * H] + r * g[:, 3 * H:4 * H])
            return (1.0 - z) * n + z * h

        def step(t, hs):
            # Layer 0: input side hoisted -> one (B,H)x(H,4H) matmul + one add.
            g0 = ih0_ref[t] + jnp.dot(
                hs[0].astype(jnp.bfloat16), w_hh0,
                preferred_element_type=jnp.float32)
            h0 = gates(g0, hs[0])
            new_hs = [h0]
            h_prev = h0
            for l, (w_p, b_bc) in enumerate(upper):
                # Upper layers: input-side + recurrent matmuls merged into ONE
                # (B,2H)x(2H,4H) MXU op with a lane-dense 128-wide output.
                inp = jnp.concatenate([h_prev, hs[l + 1]], axis=-1).astype(jnp.bfloat16)
                g = jnp.dot(inp, w_p, preferred_element_type=jnp.float32) + b_bc
                h_l = gates(g, hs[l + 1])
                new_hs.append(h_l)
                h_prev = h_l
            return tuple(new_hs)

        init = tuple(jnp.zeros((B, H), jnp.float32) for _ in range(L))
        # Full unroll at toy sequence lengths; bounded unroll beyond that keeps
        # instruction memory / vreg live ranges in check while retaining LLO
        # scheduling visibility.
        unroll = True if S <= 16 else 8
        hs = lax.fori_loop(0, S, step, init, unroll=unroll)
        out_ref[...] = hs[-1]

    return kernel


def gru_forward_pallas(packed_params, imputed):
    """imputed: (B, S', F) batch-first float32. Returns (B, H) == embedding[:, -1, :]."""
    x = jnp.asarray(imputed, jnp.float32)
    B, S, F = x.shape
    H = packed_params[0]["w_hh"].shape[0]
    L = len(packed_params)

    # Layout plumbing only: time-major + row-flatten for the hoisted projection.
    x_flat = jnp.transpose(x, (1, 0, 2)).reshape(S * B, F).astype(jnp.bfloat16)

    inputs = [x_flat, packed_params[0]["w_ih"], packed_params[0]["w_hh"],
              packed_params[0]["b"]]
    for p in packed_params[1:]:
        inputs += [p["w"], p["b"]]

    kernel = make_fused_gru_kernel(L, H, S, B)
    vmem = pl.BlockSpec(memory_space=pltpu.MemorySpace.VMEM)
    return pl.pallas_call(
        kernel,
        out_shape=jax.ShapeDtypeStruct((B, H), jnp.float32),
        in_specs=[vmem] * len(inputs),
        out_specs=vmem,
        scratch_shapes=[pltpu.VMEM((S, B, 4 * H), jnp.float32)],
        compiler_params=pltpu.CompilerParams(vmem_limit_bytes=32 * 1024 * 1024),
    )(*inputs)


# ----------------------------------------------------------------------------
# Parameters (nn.GRU-compatible shapes/init, gate order r,z,n) + packing.
# ----------------------------------------------------------------------------
def init_gru_params(key, input_dim, hidden_dim, num_layers):
    bound = 1.0 / np.sqrt(hidden_dim)
    H = hidden_dim
    feat = input_dim + 1            # nn.GRU(input_dim + 1, ...)
    params = []
    for layer in range(num_layers):
        f_in = feat if layer == 0 else H
        key, k1, k2, k3, k4 = jax.random.split(key, 5)
        # torch weight_ih_l{k}: (3H, f_in) -> transpose to (f_in, 3H) [r|z|n]
        w_ih = jax.random.uniform(k1, (3 * H, f_in), jnp.float32, -bound, bound).T
        w_hh = jax.random.uniform(k2, (3 * H, H), jnp.float32, -bound, bound).T
        b_ih = jax.random.uniform(k3, (1, 3 * H), jnp.float32, -bound, bound)
        b_hh = jax.random.uniform(k4, (1, 3 * H), jnp.float32, -bound, bound)
        params.append(dict(w_ih=w_ih, w_hh=w_hh, b_ih=b_ih, b_hh=b_hh))
    return params


def pack_gru_params(params):
    """Pack nn.GRU-layout params into the lane-dense kernel layout.

    Gate-column layout (4H -> exactly 128 lanes for H=32):
        [ r | z | n_input-side | n_hidden-side ]
    so a single matmul yields the combined r/z pre-activations plus the two
    separate n halves needed for n = tanh(ih_n + b_in + r*(hh_n + b_hn)).
    """
    H = params[0]["w_hh"].shape[0]

    def pack_cols_ih(w_ih):    # (f, 3H) -> (f, 4H): [r, z, n, 0]
        return jnp.concatenate(
            [w_ih, jnp.zeros((w_ih.shape[0], H), jnp.float32)], axis=1)

    def pack_cols_hh(w_hh):    # (H, 3H) -> (H, 4H): [r, z, 0, n]
        return jnp.concatenate(
            [w_hh[:, :2 * H], jnp.zeros((H, H), jnp.float32), w_hh[:, 2 * H:]], axis=1)

    def pack_bias(b_ih, b_hh):  # -> (1, 4H): [b_ir+b_hr, b_iz+b_hz, b_in, b_hn]
        return jnp.concatenate(
            [b_ih[:, :2 * H] + b_hh[:, :2 * H], b_ih[:, 2 * H:], b_hh[:, 2 * H:]], axis=1)

    packed = [dict(
        w_ih=pack_cols_ih(params[0]["w_ih"]).astype(jnp.bfloat16),
        w_hh=pack_cols_hh(params[0]["w_hh"]).astype(jnp.bfloat16),
        b=pack_bias(params[0]["b_ih"], params[0]["b_hh"]),
    )]
    for p in params[1:]:
        w = jnp.concatenate([pack_cols_ih(p["w_ih"]), pack_cols_hh(p["w_hh"])], axis=0)
        packed.append(dict(w=w.astype(jnp.bfloat16),
                           b=pack_bias(p["b_ih"], p["b_hh"])))
    return packed


# ----------------------------------------------------------------------------
# Host glue: exact semantics of GRU._baseline (data-dependent output shape).
# ----------------------------------------------------------------------------
def baseline_host(t, x_np):
    b, s, f = x_np.shape
    mask = ~np.isnan(x_np)
    flat = x_np[mask]
    # Same assumption as the torch glue: NaNs occur as whole timesteps with
    # equal counts per batch element, otherwise the reshape is meaningless.
    assert flat.shape[0] % (b * f) == 0, "_baseline: NaN pattern not whole-timestep"
    new_s = flat.shape[0] // (b * f)
    return flat.reshape(b, new_s, f)


def gru_forward(packed_params, t, x_np):
    # TODO(synk): _baseline's NaN filtering has a data-dependent output shape and
    # therefore runs as host-side NumPy glue rather than inside the Pallas kernel.
    imputed = baseline_host(t, x_np)
    return gru_forward_pallas(packed_params, imputed)


# ----------------------------------------------------------------------------
# Pure-JAX (f32) reference for verification
# ----------------------------------------------------------------------------
def gru_ref(params, imputed):
    x = jnp.asarray(imputed, jnp.float32)         # (B, S, F) batch-first
    B, S, _ = x.shape
    H = params[0]["w_hh"].shape[0]
    layer_in = x
    for p in params:
        h = jnp.zeros((B, H), jnp.float32)
        ys = []
        for step in range(S):
            xt = layer_in[:, step, :]
            ih = xt @ p["w_ih"] + p["b_ih"]
            hh = h @ p["w_hh"] + p["b_hh"]
            r = jax.nn.sigmoid(ih[:, :H] + hh[:, :H])
            z = jax.nn.sigmoid(ih[:, H:2 * H] + hh[:, H:2 * H])
            n = jnp.tanh(ih[:, 2 * H:] + r * hh[:, 2 * H:])
            h = (1.0 - z) * n + z * h
            ys.append(h)
        layer_in = jnp.stack(ys, axis=1)
    return layer_in[:, -1, :]


if __name__ == "__main__":
    # Module config
    input_dim, hidden_dim, num_layers = 4, 32, 2
    batch, seq_len = 2, 10
    num_features = input_dim + 1  # forward feeds x straight into nn.GRU(input_dim+1, ...)

    key = jax.random.PRNGKey(0)
    key, kp, kx = jax.random.split(key, 3)
    params = init_gru_params(kp, input_dim, hidden_dim, num_layers)
    packed = pack_gru_params(params)

    # Deterministic input with whole-NaN timesteps (same count per batch),
    # exercising the _baseline row-drop path exactly like the torch module.
    # np.array(...) makes a writable host copy (jax buffers are read-only).
    t = np.linspace(0.0, 1.0, seq_len).astype(np.float32)
    x = np.array(jax.random.normal(kx, (batch, seq_len, num_features), jnp.float32))
    x[:, 3, :] = np.nan
    x[:, 7, :] = np.nan

    out = gru_forward(packed, t, x)
    out = jax.block_until_ready(out)

    # Verify against the pure-f32 reference on the same imputed input.
    # Tolerance widened vs f32-only (2e-2): matmul operands are bf16 (f32
    # accumulation, f32 gate math) and rounding accumulates through S steps.
    ref = gru_ref(params, baseline_host(t, x))
    np.testing.assert_allclose(np.asarray(out), np.asarray(ref), rtol=2e-2, atol=2e-2)
    assert out.shape == (batch, hidden_dim)

    print("KERNEL_OK")
</pallas_src>

<mosaic_0001>
module attributes {stable_mosaic.version = 11 : i64} {
  func.func @kernel(%arg0: memref<16x5xbf16, #tpu.memory_space<vmem>>, %arg1: memref<5x128xbf16, #tpu.memory_space<vmem>>, %arg2: memref<32x128xbf16, #tpu.memory_space<vmem>>, %arg3: memref<1x128xf32, #tpu.memory_space<vmem>>, %arg4: memref<64x128xbf16, #tpu.memory_space<vmem>>, %arg5: memref<1x128xf32, #tpu.memory_space<vmem>>, %arg6: memref<2x32xf32, #tpu.memory_space<vmem>>, %arg7: memref<8x2x128xf32, #tpu.memory_space<vmem>>) attributes {dimension_semantics = [], scalar_prefetch = 0 : i64, scratch_operands = 1 : i64, tpu.core_type = #tpu.core_type<tc>} {
    %c0 = arith.constant 0 : index
    %c0_0 = arith.constant 0 : index
    %0 = vector.load %arg0[%c0, %c0_0] : memref<16x5xbf16, #tpu.memory_space<vmem>>, vector<16x5xbf16>
    %c0_1 = arith.constant 0 : index
    %c0_2 = arith.constant 0 : index
    %1 = vector.load %arg1[%c0_1, %c0_2] : memref<5x128xbf16, #tpu.memory_space<vmem>>, vector<5x128xbf16>
    %cst = arith.constant dense<0.000000e+00> : vector<16x128xf32>
    %2 = tpu.matmul %0, %1, %cst {dimension_numbers = #tpu.dot_dimension_numbers<[1], [0], [0], [1], [0, 0, 1, 1], [], []>} : vector<16x5xbf16>, vector<5x128xbf16>, vector<16x128xf32> -> vector<16x128xf32>
    %c0_3 = arith.constant 0 : index
    %c0_4 = arith.constant 0 : index
    %3 = vector.load %arg3[%c0_3, %c0_4] : memref<1x128xf32, #tpu.memory_space<vmem>>, vector<1x128xf32>
    %4 = vector.broadcast %3 : vector<1x128xf32> to vector<16x128xf32>
    %5 = arith.addf %2, %4 : vector<16x128xf32>
    %6 = vector.extract_strided_slice %5 {offsets = [0, 0], sizes = [2, 128], strides = [1, 1]} : vector<16x128xf32> to vector<2x128xf32>
    %c0_5 = arith.constant 0 : index
    %c0_6 = arith.constant 0 : index
    %c0_7 = arith.constant 0 : index
    %7 = vector.load %arg7[%c0_5, %c0_6, %c0_7] : memref<8x2x128xf32, #tpu.memory_space<vmem>>, vector<1x2x128xf32>
    %8 = vector.shape_cast %7 : vector<1x2x128xf32> to vector<2x128xf32>
    %9 = vector.shape_cast %6 : vector<2x128xf32> to vector<1x2x128xf32>
    tpu.vector_store %arg7[%c0_5, %c0_6, %c0_7], %9 {strides = array<i32>} : memref<8x2x128xf32, #tpu.memory_space<vmem>>, vector<1x2x128xf32>,
    %10 = vector.extract_strided_slice %5 {offsets = [2, 0], sizes = [2, 128], strides = [1, 1]} : vector<16x128xf32> to vector<2x128xf32>
    %c1 = arith.constant 1 : index
    %c0_8 = arith.constant 0 : index
    %c0_9 = arith.constant 0 : index
    %11 = vector.load %arg7[%c1, %c0_8, %c0_9] : memref<8x2x128xf32, #tpu.memory_space<vmem>>, vector<1x2x128xf32>
    %12 = vector.shape_cast %11 : vector<1x2x128xf32> to vector<2x128xf32>
    %13 = vector.shape_cast %10 : vector<2x128xf32> to vector<1x2x128xf32>
    tpu.vector_store %arg7[%c1, %c0_8, %c0_9], %13 {strides = array<i32>} : memref<8x2x128xf32, #tpu.memory_space<vmem>>, vector<1x2x128xf32>,
    %14 = vector.extract_strided_slice %5 {offsets = [4, 0], sizes = [2, 128], strides = [1, 1]} : vector<16x128xf32> to vector<2x128xf32>
    %c2 = arith.constant 2 : index
    %c0_10 = arith.constant 0 : index
    %c0_11 = arith.constant 0 : index
    %15 = vector.load %arg7[%c2, %c0_10, %c0_11] : memref<8x2x128xf32, #tpu.memory_space<vmem>>, vector<1x2x128xf32>
    %16 = vector.shape_cast %15 : vector<1x2x128xf32> to vector<2x128xf32>
    %17 = vector.shape_cast %14 : vector<2x128xf32> to vector<1x2x128xf32>
    tpu.vector_store %arg7[%c2, %c0_10, %c0_11], %17 {strides = array<i32>} : memref<8x2x128xf32, #tpu.memory_space<vmem>>, vector<1x2x128xf32>,
    %18 = vector.extract_strided_slice %5 {offsets = [6, 0], sizes = [2, 128], strides = [1, 1]} : vector<16x128xf32> to vector<2x128xf32>
    %c3 = arith.constant 3 : index
    %c0_12 = arith.constant 0 : index
    %c0_13 = arith.constant 0 : index
    %19 = vector.load %arg7[%c3, %c0_12, %c0_13] : memref<8x2x128xf32, #tpu.memory_space<vmem>>, vector<1x2x128xf32>
    %20 = vector.shape_cast %19 : vector<1x2x128xf32> to vector<2x128xf32>
    %21 = vector.shape_cast %18 : vector<2x128xf32> to vector<1x2x128xf32>
    tpu.vector_store %arg7[%c3, %c0_12, %c0_13], %21 {strides = array<i32>} : memref<8x2x128xf32, #tpu.memory_space<vmem>>, vector<1x2x128xf32>,
    %22 = vector.extract_strided_slice %5 {offsets = [8, 0], sizes = [2, 128], strides = [1, 1]} : vector<16x128xf32> to vector<2x128xf32>
    %c4 = arith.constant 4 : index
    %c0_14 = arith.constant 0 : index
    %c0_15 = arith.constant 0 : index
    %23 = vector.load %arg7[%c4, %c0_14, %c0_15] : memref<8x2x128xf32, #tpu.memory_space<vmem>>, vector<1x2x128xf32>
    %24 = vector.shape_cast %23 : vector<1x2x128xf32> to vector<2x128xf32>
    %25 = vector.shape_cast %22 : vector<2x128xf32> to vector<1x2x128xf32>
    tpu.vector_store %arg7[%c4, %c0_14, %c0_15], %25 {strides = array<i32>} : memref<8x2x128xf32, #tpu.memory_space<vmem>>, vector<1x2x128xf32>,
    %26 = vector.extract_strided_slice %5 {offsets = [10, 0], sizes = [2, 128], strides = [1, 1]} : vector<16x128xf32> to vector<2x128xf32>
    %c5 = arith.constant 5 : index
    %c0_16 = arith.constant 0 : index
    %c0_17 = arith.constant 0 : index
    %27 = vector.load %arg7[%c5, %c0_16, %c0_17] : memref<8x2x128xf32, #tpu.memory_space<vmem>>, vector<1x2x128xf32>
    %28 = vector.shape_cast %27 : vector<1x2x128xf32> to vector<2x128xf32>
    %29 = vector.shape_cast %26 : vector<2x128xf32> to vector<1x2x128xf32>
    tpu.vector_store %arg7[%c5, %c0_16, %c0_17], %29 {strides = array<i32>} : memref<8x2x128xf32, #tpu.memory_space<vmem>>, vector<1x2x128xf32>,
    %30 = vector.extract_strided_slice %5 {offsets = [12, 0], sizes = [2, 128], strides = [1, 1]} : vector<16x128xf32> to vector<2x128xf32>
    %c6 = arith.constant 6 : index
    %c0_18 = arith.constant 0 : index
    %c0_19 = arith.constant 0 : index
    %31 = vector.load %arg7[%c6, %c0_18, %c0_19] : memref<8x2x128xf32, #tpu.memory_space<vmem>>, vector<1x2x128xf32>
    %32 = vector.shape_cast %31 : vector<1x2x128xf32> to vector<2x128xf32>
    %33 = vector.shape_cast %30 : vector<2x128xf32> to vector<1x2x128xf32>
    tpu.vector_store %arg7[%c6, %c0_18, %c0_19], %33 {strides = array<i32>} : memref<8x2x128xf32, #tpu.memory_space<vmem>>, vector<1x2x128xf32>,
    %34 = vector.extract_strided_slice %5 {offsets = [14, 0], sizes = [2, 128], strides = [1, 1]} : vector<16x128xf32> to vector<2x128xf32>
    %c7 = arith.constant 7 : index
    %c0_20 = arith.constant 0 : index
    %c0_21 = arith.constant 0 : index
    %35 = vector.load %arg7[%c7, %c0_20, %c0_21] : memref<8x2x128xf32, #tpu.memory_space<vmem>>, vector<1x2x128xf32>
    %36 = vector.shape_cast %35 : vector<1x2x128xf32> to vector<2x128xf32>
    %37 = vector.shape_cast %34 : vector<2x128xf32> to vector<1x2x128xf32>
    tpu.vector_store %arg7[%c7, %c0_20, %c0_21], %37 {strides = array<i32>} : memref<8x2x128xf32, #tpu.memory_space<vmem>>, vector<1x2x128xf32>,
    %c0_22 = arith.constant 0 : index
    %c0_23 = arith.constant 0 : index
    %38 = vector.load %arg2[%c0_22, %c0_23] : memref<32x128xbf16, #tpu.memory_space<vmem>>, vector<32x128xbf16>
    %c0_24 = arith.constant 0 : index
    %c0_25 = arith.constant 0 : index
    %39 = vector.load %arg4[%c0_24, %c0_25] : memref<64x128xbf16, #tpu.memory_space<vmem>>, vector<64x128xbf16>
    %c0_26 = arith.constant 0 : index
    %c0_27 = arith.constant 0 : index
    %40 = vector.load %arg5[%c0_26, %c0_27] : memref<1x128xf32, #tpu.memory_space<vmem>>, vector<1x128xf32>
    %41 = vector.shape_cast %40 : vector<1x128xf32> to vector<1x128xf32>
    %42 = vector.broadcast %41 : vector<1x128xf32> to vector<2x128xf32>
    %cst_28 = arith.constant 0.000000e+00 : f32
    %43 = vector.broadcast %cst_28 : f32 to vector<2x32xf32>
    %cst_29 = arith.constant 0.000000e+00 : f32
    %44 = vector.broadcast %cst_29 : f32 to vector<2x32xf32>
    %c0_i32 = arith.constant 0 : i32
    %45 = arith.index_cast %c0_i32 : i32 to index
    %c0_30 = arith.constant 0 : index
    %c0_31 = arith.constant 0 : index
    %46 = vector.load %arg7[%45, %c0_30, %c0_31] : memref<8x2x128xf32, #tpu.memory_space<vmem>>, vector<1x2x128xf32>
    %47 = vector.shape_cast %46 : vector<1x2x128xf32> to vector<2x128xf32>
    %48 = arith.truncf %43 : vector<2x32xf32> to vector<2x32xbf16>
    %cst_32 = arith.constant dense<0.000000e+00> : vector<2x128xf32>
    %49 = tpu.matmul %48, %38, %cst_32 {dimension_numbers = #tpu.dot_dimension_numbers<[1], [0], [0], [1], [0, 0, 1, 1], [], []>} : vector<2x32xbf16>, vector<32x128xbf16>, vector<2x128xf32> -> vector<2x128xf32>
    %50 = arith.addf %47, %49 : vector<2x128xf32>
    %51 = vector.extract_strided_slice %50 {offsets = [0, 0], sizes = [2, 32], strides = [1, 1]} : vector<2x128xf32> to vector<2x32xf32>
    %52 = arith.negf %51 : vector<2x32xf32>
    %53 = math.exp %52 : vector<2x32xf32>
    %cst_33 = arith.constant 1.000000e+00 : f32
    %54 = vector.broadcast %cst_33 : f32 to vector<2x32xf32>
    %55 = arith.addf %54, %53 : vector<2x32xf32>
    %56 = arith.divf %54, %55 : vector<2x32xf32>
    %57 = vector.extract_strided_slice %50 {offsets = [0, 32], sizes = [2, 32], strides = [1, 1]} : vector<2x128xf32> to vector<2x32xf32>
    %58 = arith.negf %57 : vector<2x32xf32>
    %59 = math.exp %58 : vector<2x32xf32>
    %cst_34 = arith.constant 1.000000e+00 : f32
    %60 = vector.broadcast %cst_34 : f32 to vector<2x32xf32>
    %61 = arith.addf %60, %59 : vector<2x32xf32>
    %62 = arith.divf %60, %61 : vector<2x32xf32>
    %63 = vector.extract_strided_slice %50 {offsets = [0, 64], sizes = [2, 32], strides = [1, 1]} : vector<2x128xf32> to vector<2x32xf32>
    %64 = vector.extract_strided_slice %50 {offsets = [0, 96], sizes = [2, 32], strides = [1, 1]} : vector<2x128xf32> to vector<2x32xf32>
    %65 = arith.mulf %56, %64 : vector<2x32xf32>
    %66 = arith.addf %63, %65 : vector<2x32xf32>
    %67 = math.tanh %66 : vector<2x32xf32>
    %cst_35 = arith.constant 1.000000e+00 : f32
    %68 = vector.broadcast %cst_35 : f32 to vector<2x32xf32>
    %69 = arith.subf %68, %62 : vector<2x32xf32>
    %70 = arith.mulf %69, %67 : vector<2x32xf32>
    %71 = arith.mulf %62, %43 : vector<2x32xf32>
    %72 = arith.addf %70, %71 : vector<2x32xf32>
    %73 = tpu.concatenate %72, %44 in 1 : vector<2x32xf32>, vector<2x32xf32> -> vector<2x64xf32>
    %74 = arith.truncf %73 : vector<2x64xf32> to vector<2x64xbf16>
    %cst_36 = arith.constant dense<0.000000e+00> : vector<2x128xf32>
    %75 = tpu.matmul %74, %39, %cst_36 {dimension_numbers = #tpu.dot_dimension_numbers<[1], [0], [0], [1], [0, 0, 1, 1], [], []>} : vector<2x64xbf16>, vector<64x128xbf16>, vector<2x128xf32> -> vector<2x128xf32>
    %76 = arith.addf %75, %42 : vector<2x128xf32>
    %77 = vector.extract_strided_slice %76 {offsets = [0, 0], sizes = [2, 32], strides = [1, 1]} : vector<2x128xf32> to vector<2x32xf32>
    %78 = arith.negf %77 : vector<2x32xf32>
    %79 = math.exp %78 : vector<2x32xf32>
    %cst_37 = arith.constant 1.000000e+00 : f32
    %80 = vector.broadcast %cst_37 : f32 to vector<2x32xf32>
    %81 = arith.addf %80, %79 : vector<2x32xf32>
    %82 = arith.divf %80, %81 : vector<2x32xf32>
    %83 = vector.extract_strided_slice %76 {offsets = [0, 32], sizes = [2, 32], strides = [1, 1]} : vector<2x128xf32> to vector<2x32xf32>
    %84 = arith.negf %83 : vector<2x32xf32>
    %85 = math.exp %84 : vector<2x32xf32>
    %cst_38 = arith.constant 1.000000e+00 : f32
    %86 = vector.broadcast %cst_38 : f32 to vector<2x32xf32>
    %87 = arith.addf %86, %85 : vector<2x32xf32>
    %88 = arith.divf %86, %87 : vector<2x32xf32>
    %89 = vector.extract_strided_slice %76 {offsets = [0, 64], sizes = [2, 32], strides = [1, 1]} : vector<2x128xf32> to vector<2x32xf32>
    %90 = vector.extract_strided_slice %76 {offsets = [0, 96], sizes = [2, 32], strides = [1, 1]} : vector<2x128xf32> to vector<2x32xf32>
    %91 = arith.mulf %82, %90 : vector<2x32xf32>
    %92 = arith.addf %89, %91 : vector<2x32xf32>
    %93 = math.tanh %92 : vector<2x32xf32>
    %cst_39 = arith.constant 1.000000e+00 : f32
    %94 = vector.broadcast %cst_39 : f32 to vector<2x32xf32>
    %95 = arith.subf %94, %88 : vector<2x32xf32>
    %96 = arith.mulf %95, %93 : vector<2x32xf32>
    %97 = arith.mulf %88, %44 : vector<2x32xf32>
    %98 = arith.addf %96, %97 : vector<2x32xf32>
    %c1_i32 = arith.constant 1 : i32
    %99 = arith.index_cast %c1_i32 : i32 to index
    %c0_40 = arith.constant 0 : index
    %c0_41 = arith.constant 0 : index
    %100 = vector.load %arg7[%99, %c0_40, %c0_41] : memref<8x2x128xf32, #tpu.memory_space<vmem>>, vector<1x2x128xf32>
    %101 = vector.shape_cast %100 : vector<1x2x128xf32> to vector<2x128xf32>
    %102 = arith.truncf %72 : vector<2x32xf32> to vector<2x32xbf16>
    %cst_42 = arith.constant dense<0.000000e+00> : vector<2x128xf32>
    %103 = tpu.matmul %102, %38, %cst_42 {dimension_numbers = #tpu.dot_dimension_numbers<[1], [0], [0], [1], [0, 0, 1, 1], [], []>} : vector<2x32xbf16>, vector<32x128xbf16>, vector<2x128xf32> -> vector<2x128xf32>
    %104 = arith.addf %101, %103 : vector<2x128xf32>
    %105 = vector.extract_strided_slice %104 {offsets = [0, 0], sizes = [2, 32], strides = [1, 1]} : vector<2x128xf32> to vector<2x32xf32>
    %106 = arith.negf %105 : vector<2x32xf32>
    %107 = math.exp %106 : vector<2x32xf32>
    %cst_43 = arith.constant 1.000000e+00 : f32
    %108 = vector.broadcast %cst_43 : f32 to vector<2x32xf32>
    %109 = arith.addf %108, %107 : vector<2x32xf32>
    %110 = arith.divf %108, %109 : vector<2x32xf32>
    %111 = vector.extract_strided_slice %104 {offsets = [0, 32], sizes = [2, 32], strides = [1, 1]} : vector<2x128xf32> to vector<2x32xf32>
    %112 = arith.negf %111 : vector<2x32xf32>
    %113 = math.exp %112 : vector<2x32xf32>
    %cst_44 = arith.constant 1.000000e+00 : f32
    %114 = vector.broadcast %cst_44 : f32 to vector<2x32xf32>
    %115 = arith.addf %114, %113 : vector<2x32xf32>
    %116 = arith.divf %114, %115 : vector<2x32xf32>
    %117 = vector.extract_strided_slice %104 {offsets = [0, 64], sizes = [2, 32], strides = [1, 1]} : vector<2x128xf32> to vector<2x32xf32>
    %118 = vector.extract_strided_slice %104 {offsets = [0, 96], sizes = [2, 32], strides = [1, 1]} : vector<2x128xf32> to vector<2x32xf32>
    %119 = arith.mulf %110, %118 : vector<2x32xf32>
    %120 = arith.addf %117, %119 : vector<2x32xf32>
    %121 = math.tanh %120 : vector<2x32xf32>
    %cst_45 = arith.constant 1.000000e+00 : f32
    %122 = vector.broadcast %cst_45 : f32 to vector<2x32xf32>
    %123 = arith.subf %122, %116 : vector<2x32xf32>
    %124 = arith.mulf %123, %121 : vector<2x32xf32>
    %125 = arith.mulf %116, %72 : vector<2x32xf32>
    %126 = arith.addf %124, %125 : vector<2x32xf32>
    %127 = tpu.concatenate %126, %98 in 1 : vector<2x32xf32>, vector<2x32xf32> -> vector<2x64xf32>
    %128 = arith.truncf %127 : vector<2x64xf32> to vector<2x64xbf16>
    %cst_46 = arith.constant dense<0.000000e+00> : vector<2x128xf32>
    %129 = tpu.matmul %128, %39, %cst_46 {dimension_numbers = #tpu.dot_dimension_numbers<[1], [0], [0], [1], [0, 0, 1, 1], [], []>} : vector<2x64xbf16>, vector<64x128xbf16>, vector<2x128xf32> -> vector<2x128xf32>
    %130 = arith.addf %129, %42 : vector<2x128xf32>
    %131 = vector.extract_strided_slice %130 {offsets = [0, 0], sizes = [2, 32], strides = [1, 1]} : vector<2x128xf32> to vector<2x32xf32>
    %132 = arith.negf %131 : vector<2x32xf32>
    %133 = math.exp %132 : vector<2x32xf32>
    %cst_47 = arith.constant 1.000000e+00 : f32
    %134 = vector.broadcast %cst_47 : f32 to vector<2x32xf32>
    %135 = arith.addf %134, %133 : vector<2x32xf32>
    %136 = arith.divf %134, %135 : vector<2x32xf32>
    %137 = vector.extract_strided_slice %130 {offsets = [0, 32], sizes = [2, 32], strides = [1, 1]} : vector<2x128xf32> to vector<2x32xf32>
    %138 = arith.negf %137 : vector<2x32xf32>
    %139 = math.exp %138 : vector<2x32xf32>
    %cst_48 = arith.constant 1.000000e+00 : f32
    %140 = vector.broadcast %cst_48 : f32 to vector<2x32xf32>
    %141 = arith.addf %140, %139 : vector<2x32xf32>
    %142 = arith.divf %140, %141 : vector<2x32xf32>
    %143 = vector.extract_strided_slice %130 {offsets = [0, 64], sizes = [2, 32], strides = [1, 1]} : vector<2x128xf32> to vector<2x32xf32>
    %144 = vector.extract_strided_slice %130 {offsets = [0, 96], sizes = [2, 32], strides = [1, 1]} : vector<2x128xf32> to vector<2x32xf32>
    %145 = arith.mulf %136, %144 : vector<2x32xf32>
    %146 = arith.addf %143, %145 : vector<2x32xf32>
    %147 = math.tanh %146 : vector<2x32xf32>
    %cst_49 = arith.constant 1.000000e+00 : f32
    %148 = vector.broadcast %cst_49 : f32 to vector<2x32xf32>
    %149 = arith.subf %148, %142 : vector<2x32xf32>
    %150 = arith.mulf %149, %147 : vector<2x32xf32>
    %151 = arith.mulf %142, %98 : vector<2x32xf32>
    %152 = arith.addf %150, %151 : vector<2x32xf32>
    %c2_i32 = arith.constant 2 : i32
    %153 = arith.index_cast %c2_i32 : i32 to index
    %c0_50 = arith.constant 0 : index
    %c0_51 = arith.constant 0 : index
    %154 = vector.load %arg7[%153, %c0_50, %c0_51] : memref<8x2x128xf32, #tpu.memory_space<vmem>>, vector<1x2x128xf32>
    %155 = vector.shape_cast %154 : vector<1x2x128xf32> to vector<2x128xf32>
    %156 = arith.truncf %126 : vector<2x32xf32> to vector<2x32xbf16>
    %cst_52 = arith.constant dense<0.000000e+00> : vector<2x128xf32>
    %157 = tpu.matmul %156, %38, %cst_52 {dimension_numbers = #tpu.dot_dimension_numbers<[1], [0], [0], [1], [0, 0, 1, 1], [], []>} : vector<2x32xbf16>, vector<32x128xbf16>, vector<2x128xf32> -> vector<2x128xf32>
    %158 = arith.addf %155, %157 : vector<2x128xf32>
    %159 = vector.extract_strided_slice %158 {offsets = [0, 0], sizes = [2, 32], strides = [1, 1]} : vector<2x128xf32> to vector<2x32xf32>
    %160 = arith.negf %159 : vector<2x32xf32>
    %161 = math.exp %160 : vector<2x32xf32>
    %cst_53 = arith.constant 1.000000e+00 : f32
    %162 = vector.broadcast %cst_53 : f32 to vector<2x32xf32>
    %163 = arith.addf %162, %161 : vector<2x32xf32>
    %164 = arith.divf %162, %163 : vector<2x32xf32>
    %165 = vector.extract_strided_slice %158 {offsets = [0, 32], sizes = [2, 32], strides = [1, 1]} : vector<2x128xf32> to vector<2x32xf32>
    %166 = arith.negf %165 : vector<2x32xf32>
    %167 = math.exp %166 : vector<2x32xf32>
    %cst_54 = arith.constant 1.000000e+00 : f32
    %168 = vector.broadcast %cst_54 : f32 to vector<2x32xf32>
    %169 = arith.addf %168, %167 : vector<2x32xf32>
    %170 = arith.divf %168, %169 : vector<2x32xf32>
    %171 = vector.extract_strided_slice %158 {offsets = [0, 64], sizes = [2, 32], strides = [1, 1]} : vector<2x128xf32> to vector<2x32xf32>
    %172 = vector.extract_strided_slice %158 {offsets = [0, 96], sizes = [2, 32], strides = [1, 1]} : vector<2x128xf32> to vector<2x32xf32>
    %173 = arith.mulf %164, %172 : vector<2x32xf32>
    %174 = arith.addf %171, %173 : vector<2x32xf32>
    %175 = math.tanh %174 : vector<2x32xf32>
    %cst_55 = arith.constant 1.000000e+00 : f32
    %176 = vector.broadcast %cst_55 : f32 to vector<2x32xf32>
    %177 = arith.subf %176, %170 : vector<2x32xf32>
    %178 = arith.mulf %177, %175 : vector<2x32xf32>
    %179 = arith.mulf %170, %126 : vector<2x32xf32>
    %180 = arith.addf %178, %179 : vector<2x32xf32>
    %181 = tpu.concatenate %180, %152 in 1 : vector<2x32xf32>, vector<2x32xf32> -> vector<2x64xf32>
    %182 = arith.truncf %181 : vector<2x64xf32> to vector<2x64xbf16>
    %cst_56 = arith.constant dense<0.000000e+00> : vector<2x128xf32>
    %183 = tpu.matmul %182, %39, %cst_56 {dimension_numbers = #tpu.dot_dimension_numbers<[1], [0], [0], [1], [0, 0, 1, 1], [], []>} : vector<2x64xbf16>, vector<64x128xbf16>, vector<2x128xf32> -> vector<2x128xf32>
    %184 = arith.addf %183, %42 : vector<2x128xf32>
    %185 = vector.extract_strided_slice %184 {offsets = [0, 0], sizes = [2, 32], strides = [1, 1]} : vector<2x128xf32> to vector<2x32xf32>
    %186 = arith.negf %185 : vector<2x32xf32>
    %187 = math.exp %186 : vector<2x32xf32>
    %cst_57 = arith.constant 1.000000e+00 : f32
    %188 = vector.broadcast %cst_57 : f32 to vector<2x32xf32>
    %189 = arith.addf %188, %187 : vector<2x32xf32>
    %190 = arith.divf %188, %189 : vector<2x32xf32>
    %191 = vector.extract_strided_slice %184 {offsets = [0, 32], sizes = [2, 32], strides = [1, 1]} : vector<2x128xf32> to vector<2x32xf32>
    %192 = arith.negf %191 : vector<2x32xf32>
    %193 = math.exp %192 : vector<2x32xf32>
    %cst_58 = arith.constant 1.000000e+00 : f32
    %194 = vector.broadcast %cst_58 : f32 to vector<2x32xf32>
    %195 = arith.addf %194, %193 : vector<2x32xf32>
    %196 = arith.divf %194, %195 : vector<2x32xf32>
    %197 = vector.extract_strided_slice %184 {offsets = [0, 64], sizes = [2, 32], strides = [1, 1]} : vector<2x128xf32> to vector<2x32xf32>
    %198 = vector.extract_strided_slice %184 {offsets = [0, 96], sizes = [2, 32], strides = [1, 1]} : vector<2x128xf32> to vector<2x32xf32>
    %199 = arith.mulf %190, %198 : vector<2x32xf32>
    %200 = arith.addf %197, %199 : vector<2x32xf32>
    %201 = math.tanh %200 : vector<2x32xf32>
    %cst_59 = arith.constant 1.000000e+00 : f32
    %202 = vector.broadcast %cst_59 : f32 to vector<2x32xf32>
    %203 = arith.subf %202, %196 : vector<2x32xf32>
    %204 = arith.mulf %203, %201 : vector<2x32xf32>
    %205 = arith.mulf %196, %152 : vector<2x32xf32>
    %206 = arith.addf %204, %205 : vector<2x32xf32>
    %c3_i32 = arith.constant 3 : i32
    %207 = arith.index_cast %c3_i32 : i32 to index
    %c0_60 = arith.constant 0 : index
    %c0_61 = arith.constant 0 : index
    %208 = vector.load %arg7[%207, %c0_60, %c0_61] : memref<8x2x128xf32, #tpu.memory_space<vmem>>, vector<1x2x128xf32>
    %209 = vector.shape_cast %208 : vector<1x2x128xf32> to vector<2x128xf32>
    %210 = arith.truncf %180 : vector<2x32xf32> to vector<2x32xbf16>
    %cst_62 = arith.constant dense<0.000000e+00> : vector<2x128xf32>
    %211 = tpu.matmul %210, %38, %cst_62 {dimension_numbers = #tpu.dot_dimension_numbers<[1], [0], [0], [1], [0, 0, 1, 1], [], []>} : vector<2x32xbf16>, vector<32x128xbf16>, vector<2x128xf32> -> vector<2x128xf32>
    %212 = arith.addf %209, %211 : vector<2x128xf32>
    %213 = vector.extract_strided_slice %212 {offsets = [0, 0], sizes = [2, 32], strides = [1, 1]} : vector<2x128xf32> to vector<2x32xf32>
    %214 = arith.negf %213 : vector<2x32xf32>
    %215 = math.exp %214 : vector<2x32xf32>
    %cst_63 = arith.constant 1.000000e+00 : f32
    %216 = vector.broadcast %cst_63 : f32 to vector<2x32xf32>
    %217 = arith.addf %216, %215 : vector<2x32xf32>
    %218 = arith.divf %216, %217 : vector<2x32xf32>
    %219 = vector.extract_strided_slice %212 {offsets = [0, 32], sizes = [2, 32], strides = [1, 1]} : vector<2x128xf32> to vector<2x32xf32>
    %220 = arith.negf %219 : vector<2x32xf32>
    %221 = math.exp %220 : vector<2x32xf32>
    %cst_64 = arith.constant 1.000000e+00 : f32
    %222 = vector.broadcast %cst_64 : f32 to vector<2x32xf32>
    %223 = arith.addf %222, %221 : vector<2x32xf32>
    %224 = arith.divf %222, %223 : vector<2x32xf32>
    %225 = vector.extract_strided_slice %212 {offsets = [0, 64], sizes = [2, 32], strides = [1, 1]} : vector<2x128xf32> to vector<2x32xf32>
    %226 = vector.extract_strided_slice %212 {offsets = [0, 96], sizes = [2, 32], strides = [1, 1]} : vector<2x128xf32> to vector<2x32xf32>
    %227 = arith.mulf %218, %226 : vector<2x32xf32>
    %228 = arith.addf %225, %227 : vector<2x32xf32>
    %229 = math.tanh %228 : vector<2x32xf32>
    %cst_65 = arith.constant 1.000000e+00 : f32
    %230 = vector.broadcast %cst_65 : f32 to vector<2x32xf32>
    %231 = arith.subf %230, %224 : vector<2x32xf32>
    %232 = arith.mulf %231, %229 : vector<2x32xf32>
    %233 = arith.mulf %224, %180 : vector<2x32xf32>
    %234 = arith.addf %232, %233 : vector<2x32xf32>
    %235 = tpu.concatenate %234, %206 in 1 : vector<2x32xf32>, vector<2x32xf32> -> vector<2x64xf32>
    %236 = arith.truncf %235 : vector<2x64xf32> to vector<2x64xbf16>
    %cst_66 = arith.constant dense<0.000000e+00> : vector<2x128xf32>
    %237 = tpu.matmul %236, %39, %cst_66 {dimension_numbers = #tpu.dot_dimension_numbers<[1], [0], [0], [1], [0, 0, 1, 1], [], []>} : vector<2x64xbf16>, vector<64x128xbf16>, vector<2x128xf32> -> vector<2x128xf32>
    %238 = arith.addf %237, %42 : vector<2x128xf32>
    %239 = vector.extract_strided_slice %238 {offsets = [0, 0], sizes = [2, 32], strides = [1, 1]} : vector<2x128xf32> to vector<2x32xf32>
    %240 = arith.negf %239 : vector<2x32xf32>
    %241 = math.exp %240 : vector<2x32xf32>
    %cst_67 = arith.constant 1.000000e+00 : f32
    %242 = vector.broadcast %cst_67 : f32 to vector<2x32xf32>
    %243 = arith.addf %242, %241 : vector<2x32xf32>
    %244 = arith.divf %242, %243 : vector<2x32xf32>
    %245 = vector.extract_strided_slice %238 {offsets = [0, 32], sizes = [2, 32], strides = [1, 1]} : vector<2x128xf32> to vector<2x32xf32>
    %246 = arith.negf %245 : vector<2x32xf32>
    %247 = math.exp %246 : vector<2x32xf32>
    %cst_68 = arith.constant 1.000000e+00 : f32
    %248 = vector.broadcast %cst_68 : f32 to vector<2x32xf32>
    %249 = arith.addf %248, %247 : vector<2x32xf32>
    %250 = arith.divf %248, %249 : vector<2x32xf32>
    %251 = vector.extract_strided_slice %238 {offsets = [0, 64], sizes = [2, 32], strides = [1, 1]} : vector<2x128xf32> to vector<2x32xf32>
    %252 = vector.extract_strided_slice %238 {offsets = [0, 96], sizes = [2, 32], strides = [1, 1]} : vector<2x128xf32> to vector<2x32xf32>
    %253 = arith.mulf %244, %252 : vector<2x32xf32>
    %254 = arith.addf %251, %253 : vector<2x32xf32>
    %255 = math.tanh %254 : vector<2x32xf32>
    %cst_69 = arith.constant 1.000000e+00 : f32
    %256 = vector.broadcast %cst_69 : f32 to vector<2x32xf32>
    %257 = arith.subf %256, %250 : vector<2x32xf32>
    %258 = arith.mulf %257, %255 : vector<2x32xf32>
    %259 = arith.mulf %250, %206 : vector<2x32xf32>
    %260 = arith.addf %258, %259 : vector<2x32xf32>
    %c4_i32 = arith.constant 4 : i32
    %261 = arith.index_cast %c4_i32 : i32 to index
    %c0_70 = arith.constant 0 : index
    %c0_71 = arith.constant 0 : index
    %262 = vector.load %arg7[%261, %c0_70, %c0_71] : memref<8x2x128xf32, #tpu.memory_space<vmem>>, vector<1x2x128xf32>
    %263 = vector.shape_cast %262 : vector<1x2x128xf32> to vector<2x128xf32>
    %264 = arith.truncf %234 : vector<2x32xf32> to vector<2x32xbf16>
    %cst_72 = arith.constant dense<0.000000e+00> : vector<2x128xf32>
    %265 = tpu.matmul %264, %38, %cst_72 {dimension_numbers = #tpu.dot_dimension_numbers<[1], [0], [0], [1], [0, 0, 1, 1], [], []>} : vector<2x32xbf16>, vector<32x128xbf16>, vector<2x128xf32> -> vector<2x128xf32>
    %266 = arith.addf %263, %265 : vector<2x128xf32>
    %267 = vector.extract_strided_slice %266 {offsets = [0, 0], sizes = [2, 32], strides = [1, 1]} : vector<2x128xf32> to vector<2x32xf32>
    %268 = arith.negf %267 : vector<2x32xf32>
    %269 = math.exp %268 : vector<2x32xf32>
    %cst_73 = arith.constant 1.000000e+00 : f32
    %270 = vector.broadcast %cst_73 : f32 to vector<2x32xf32>
    %271 = arith.addf %270, %269 : vector<2x32xf32>
    %272 = arith.divf %270, %271 : vector<2x32xf32>
    %273 = vector.extract_strided_slice %266 {offsets = [0, 32], sizes = [2, 32], strides = [1, 1]} : vector<2x128xf32> to vector<2x32xf32>
    %274 = arith.negf %273 : vector<2x32xf32>
    %275 = math.exp %274 : vector<2x32xf32>
    %cst_74 = arith.constant 1.000000e+00 : f32
    %276 = vector.broadcast %cst_74 : f32 to vector<2x32xf32>
    %277 = arith.addf %276, %275 : vector<2x32xf32>
    %278 = arith.divf %276, %277 : vector<2x32xf32>
    %279 = vector.extract_strided_slice %266 {offsets = [0, 64], sizes = [2, 32], strides = [1, 1]} : vector<2x128xf32> to vector<2x32xf32>
    %280 = vector.extract_strided_slice %266 {offsets = [0, 96], sizes = [2, 32], strides = [1, 1]} : vector<2x128xf32> to vector<2x32xf32>
    %281 = arith.mulf %272, %280 : vector<2x32xf32>
    %282 = arith.addf %279, %281 : vector<2x32xf32>
    %283 = math.tanh %282 : vector<2x32xf32>
    %cst_75 = arith.constant 1.000000e+00 : f32
    %284 = vector.broadcast %cst_75 : f32 to vector<2x32xf32>
    %285 = arith.subf %284, %278 : vector<2x32xf32>
    %286 = arith.mulf %285, %283 : vector<2x32xf32>
    %287 = arith.mulf %278, %234 : vector<2x32xf32>
    %288 = arith.addf %286, %287 : vector<2x32xf32>
    %289 = tpu.concatenate %288, %260 in 1 : vector<2x32xf32>, vector<2x32xf32> -> vector<2x64xf32>
    %290 = arith.truncf %289 : vector<2x64xf32> to vector<2x64xbf16>
    %cst_76 = arith.constant dense<0.000000e+00> : vector<2x128xf32>
    %291 = tpu.matmul %290, %39, %cst_76 {dimension_numbers = #tpu.dot_dimension_numbers<[1], [0], [0], [1], [0, 0, 1, 1], [], []>} : vector<2x64xbf16>, vector<64x128xbf16>, vector<2x128xf32> -> vector<2x128xf32>
    %292 = arith.addf %291, %42 : vector<2x128xf32>
    %293 = vector.extract_strided_slice %292 {offsets = [0, 0], sizes = [2, 32], strides = [1, 1]} : vector<2x128xf32> to vector<2x32xf32>
    %294 = arith.negf %293 : vector<2x32xf32>
    %295 = math.exp %294 : vector<2x32xf32>
    %cst_77 = arith.constant 1.000000e+00 : f32
    %296 = vector.broadcast %cst_77 : f32 to vector<2x32xf32>
    %297 = arith.addf %296, %295 : vector<2x32xf32>
    %298 = arith.divf %296, %297 : vector<2x32xf32>
    %299 = vector.extract_strided_slice %292 {offsets = [0, 32], sizes = [2, 32], strides = [1, 1]} : vector<2x128xf32> to vector<2x32xf32>
    %300 = arith.negf %299 : vector<2x32xf32>
    %301 = math.exp %300 : vector<2x32xf32>
    %cst_78 = arith.constant 1.000000e+00 : f32
    %302 = vector.broadcast %cst_78 : f32 to vector<2x32xf32>
    %303 = arith.addf %302, %301 : vector<2x32xf32>
    %304 = arith.divf %302, %303 : vector<2x32xf32>
    %305 = vector.extract_strided_slice %292 {offsets = [0, 64], sizes = [2, 32], strides = [1, 1]} : vector<2x128xf32> to vector<2x32xf32>
    %306 = vector.extract_strided_slice %292 {offsets = [0, 96], sizes = [2, 32], strides = [1, 1]} : vector<2x128xf32> to vector<2x32xf32>
    %307 = arith.mulf %298, %306 : vector<2x32xf32>
    %308 = arith.addf %305, %307 : vector<2x32xf32>
    %309 = math.tanh %308 : vector<2x32xf32>
    %cst_79 = arith.constant 1.000000e+00 : f32
    %310 = vector.broadcast %cst_79 : f32 to vector<2x32xf32>
    %311 = arith.subf %310, %304 : vector<2x32xf32>
    %312 = arith.mulf %311, %309 : vector<2x32xf32>
    %313 = arith.mulf %304, %260 : vector<2x32xf32>
    %314 = arith.addf %312, %313 : vector<2x32xf32>
    %c5_i32 = arith.constant 5 : i32
    %315 = arith.index_cast %c5_i32 : i32 to index
    %c0_80 = arith.constant 0 : index
    %c0_81 = arith.constant 0 : index
    %316 = vector.load %arg7[%315, %c0_80, %c0_81] : memref<8x2x128xf32, #tpu.memory_space<vmem>>, vector<1x2x128xf32>
    %317 = vector.shape_cast %316 : vector<1x2x128xf32> to vector<2x128xf32>
    %318 = arith.truncf %288 : vector<2x32xf32> to vector<2x32xbf16>
    %cst_82 = arith.constant dense<0.000000e+00> : vector<2x128xf32>
    %319 = tpu.matmul %318, %38, %cst_82 {dimension_numbers = #tpu.dot_dimension_numbers<[1], [0], [0], [1], [0, 0, 1, 1], [], []>} : vector<2x32xbf16>, vector<32x128xbf16>, vector<2x128xf32> -> vector<2x128xf32>
    %320 = arith.addf %317, %319 : vector<2x128xf32>
    %321 = vector.extract_strided_slice %320 {offsets = [0, 0], sizes = [2, 32], strides = [1, 1]} : vector<2x128xf32> to vector<2x32xf32>
    %322 = arith.negf %321 : vector<2x32xf32>
    %323 = math.exp %322 : vector<2x32xf32>
    %cst_83 = arith.constant 1.000000e+00 : f32
    %324 = vector.broadcast %cst_83 : f32 to vector<2x32xf32>
    %325 = arith.addf %324, %323 : vector<2x32xf32>
    %326 = arith.divf %324, %325 : vector<2x32xf32>
    %327 = vector.extract_strided_slice %320 {offsets = [0, 32], sizes = [2, 32], strides = [1, 1]} : vector<2x128xf32> to vector<2x32xf32>
    %328 = arith.negf %327 : vector<2x32xf32>
    %329 = math.exp %328 : vector<2x32xf32>
    %cst_84 = arith.constant 1.000000e+00 : f32
    %330 = vector.broadcast %cst_84 : f32 to vector<2x32xf32>
    %331 = arith.addf %330, %329 : vector<2x32xf32>
    %332 = arith.divf %330, %331 : vector<2x32xf32>
    %333 = vector.extract_strided_slice %320 {offsets = [0, 64], sizes = [2, 32], strides = [1, 1]} : vector<2x128xf32> to vector<2x32xf32>
    %334 = vector.extract_strided_slice %320 {offsets = [0, 96], sizes = [2, 32], strides = [1, 1]} : vector<2x128xf32> to vector<2x32xf32>
    %335 = arith.mulf %326, %334 : vector<2x32xf32>
    %336 = arith.addf %333, %335 : vector<2x32xf32>
    %337 = math.tanh %336 : vector<2x32xf32>
    %cst_85 = arith.constant 1.000000e+00 : f32
    %338 = vector.broadcast %cst_85 : f32 to vector<2x32xf32>
    %339 = arith.subf %338, %332 : vector<2x32xf32>
    %340 = arith.mulf %339, %337 : vector<2x32xf32>
    %341 = arith.mulf %332, %288 : vector<2x32xf32>
    %342 = arith.addf %340, %341 : vector<2x32xf32>
    %343 = tpu.concatenate %342, %314 in 1 : vector<2x32xf32>, vector<2x32xf32> -> vector<2x64xf32>
    %344 = arith.truncf %343 : vector<2x64xf32> to vector<2x64xbf16>
    %cst_86 = arith.constant dense<0.000000e+00> : vector<2x128xf32>
    %345 = tpu.matmul %344, %39, %cst_86 {dimension_numbers = #tpu.dot_dimension_numbers<[1], [0], [0], [1], [0, 0, 1, 1], [], []>} : vector<2x64xbf16>, vector<64x128xbf16>, vector<2x128xf32> -> vector<2x128xf32>
    %346 = arith.addf %345, %42 : vector<2x128xf32>
    %347 = vector.extract_strided_slice %346 {offsets = [0, 0], sizes = [2, 32], strides = [1, 1]} : vector<2x128xf32> to vector<2x32xf32>
    %348 = arith.negf %347 : vector<2x32xf32>
    %349 = math.exp %348 : vector<2x32xf32>
    %cst_87 = arith.constant 1.000000e+00 : f32
    %350 = vector.broadcast %cst_87 : f32 to vector<2x32xf32>
    %351 = arith.addf %350, %349 : vector<2x32xf32>
    %352 = arith.divf %350, %351 : vector<2x32xf32>
    %353 = vector.extract_strided_slice %346 {offsets = [0, 32], sizes = [2, 32], strides = [1, 1]} : vector<2x128xf32> to vector<2x32xf32>
    %354 = arith.negf %353 : vector<2x32xf32>
    %355 = math.exp %354 : vector<2x32xf32>
    %cst_88 = arith.constant 1.000000e+00 : f32
    %356 = vector.broadcast %cst_88 : f32 to vector<2x32xf32>
    %357 = arith.addf %356, %355 : vector<2x32xf32>
    %358 = arith.divf %356, %357 : vector<2x32xf32>
    %359 = vector.extract_strided_slice %346 {offsets = [0, 64], sizes = [2, 32], strides = [1, 1]} : vector<2x128xf32> to vector<2x32xf32>
    %360 = vector.extract_strided_slice %346 {offsets = [0, 96], sizes = [2, 32], strides = [1, 1]} : vector<2x128xf32> to vector<2x32xf32>
    %361 = arith.mulf %352, %360 : vector<2x32xf32>
    %362 = arith.addf %359, %361 : vector<2x32xf32>
    %363 = math.tanh %362 : vector<2x32xf32>
    %cst_89 = arith.constant 1.000000e+00 : f32
    %364 = vector.broadcast %cst_89 : f32 to vector<2x32xf32>
    %365 = arith.subf %364, %358 : vector<2x32xf32>
    %366 = arith.mulf %365, %363 : vector<2x32xf32>
    %367 = arith.mulf %358, %314 : vector<2x32xf32>
    %368 = arith.addf %366, %367 : vector<2x32xf32>
    %c6_i32 = arith.constant 6 : i32
    %369 = arith.index_cast %c6_i32 : i32 to index
    %c0_90 = arith.constant 0 : index
    %c0_91 = arith.constant 0 : index
    %370 = vector.load %arg7[%369, %c0_90, %c0_91] : memref<8x2x128xf32, #tpu.memory_space<vmem>>, vector<1x2x128xf32>
    %371 = vector.shape_cast %370 : vector<1x2x128xf32> to vector<2x128xf32>
    %372 = arith.truncf %342 : vector<2x32xf32> to vector<2x32xbf16>
    %cst_92 = arith.constant dense<0.000000e+00> : vector<2x128xf32>
    %373 = tpu.matmul %372, %38, %cst_92 {dimension_numbers = #tpu.dot_dimension_numbers<[1], [0], [0], [1], [0, 0, 1, 1], [], []>} : vector<2x32xbf16>, vector<32x128xbf16>, vector<2x128xf32> -> vector<2x128xf32>
    %374 = arith.addf %371, %373 : vector<2x128xf32>
    %375 = vector.extract_strided_slice %374 {offsets = [0, 0], sizes = [2, 32], strides = [1, 1]} : vector<2x128xf32> to vector<2x32xf32>
    %376 = arith.negf %375 : vector<2x32xf32>
    %377 = math.exp %376 : vector<2x32xf32>
    %cst_93 = arith.constant 1.000000e+00 : f32
    %378 = vector.broadcast %cst_93 : f32 to vector<2x32xf32>
    %379 = arith.addf %378, %377 : vector<2x32xf32>
    %380 = arith.divf %378, %379 : vector<2x32xf32>
    %381 = vector.extract_strided_slice %374 {offsets = [0, 32], sizes = [2, 32], strides = [1, 1]} : vector<2x128xf32> to vector<2x32xf32>
    %382 = arith.negf %381 : vector<2x32xf32>
    %383 = math.exp %382 : vector<2x32xf32>
    %cst_94 = arith.constant 1.000000e+00 : f32
    %384 = vector.broadcast %cst_94 : f32 to vector<2x32xf32>
    %385 = arith.addf %384, %383 : vector<2x32xf32>
    %386 = arith.divf %384, %385 : vector<2x32xf32>
    %387 = vector.extract_strided_slice %374 {offsets = [0, 64], sizes = [2, 32], strides = [1, 1]} : vector<2x128xf32> to vector<2x32xf32>
    %388 = vector.extract_strided_slice %374 {offsets = [0, 96], sizes = [2, 32], strides = [1, 1]} : vector<2x128xf32> to vector<2x32xf32>
    %389 = arith.mulf %380, %388 : vector<2x32xf32>
    %390 = arith.addf %387, %389 : vector<2x32xf32>
    %391 = math.tanh %390 : vector<2x32xf32>
    %cst_95 = arith.constant 1.000000e+00 : f32
    %392 = vector.broadcast %cst_95 : f32 to vector<2x32xf32>
    %393 = arith.subf %392, %386 : vector<2x32xf32>
    %394 = arith.mulf %393, %391 : vector<2x32xf32>
    %395 = arith.mulf %386, %342 : vector<2x32xf32>
    %396 = arith.addf %394, %395 : vector<2x32xf32>
    %397 = tpu.concatenate %396, %368 in 1 : vector<2x32xf32>, vector<2x32xf32> -> vector<2x64xf32>
    %398 = arith.truncf %397 : vector<2x64xf32> to vector<2x64xbf16>
    %cst_96 = arith.constant dense<0.000000e+00> : vector<2x128xf32>
    %399 = tpu.matmul %398, %39, %cst_96 {dimension_numbers = #tpu.dot_dimension_numbers<[1], [0], [0], [1], [0, 0, 1, 1], [], []>} : vector<2x64xbf16>, vector<64x128xbf16>, vector<2x128xf32> -> vector<2x128xf32>
    %400 = arith.addf %399, %42 : vector<2x128xf32>
    %401 = vector.extract_strided_slice %400 {offsets = [0, 0], sizes = [2, 32], strides = [1, 1]} : vector<2x128xf32> to vector<2x32xf32>
    %402 = arith.negf %401 : vector<2x32xf32>
    %403 = math.exp %402 : vector<2x32xf32>
    %cst_97 = arith.constant 1.000000e+00 : f32
    %404 = vector.broadcast %cst_97 : f32 to vector<2x32xf32>
    %405 = arith.addf %404, %403 : vector<2x32xf32>
    %406 = arith.divf %404, %405 : vector<2x32xf32>
    %407 = vector.extract_strided_slice %400 {offsets = [0, 32], sizes = [2, 32], strides = [1, 1]} : vector<2x128xf32> to vector<2x32xf32>
    %408 = arith.negf %407 : vector<2x32xf32>
    %409 = math.exp %408 : vector<2x32xf32>
    %cst_98 = arith.constant 1.000000e+00 : f32
    %410 = vector.broadcast %cst_98 : f32 to vector<2x32xf32>
    %411 = arith.addf %410, %409 : vector<2x32xf32>
    %412 = arith.divf %410, %411 : vector<2x32xf32>
    %413 = vector.extract_strided_slice %400 {offsets = [0, 64], sizes = [2, 32], strides = [1, 1]} : vector<2x128xf32> to vector<2x32xf32>
    %414 = vector.extract_strided_slice %400 {offsets = [0, 96], sizes = [2, 32], strides = [1, 1]} : vector<2x128xf32> to vector<2x32xf32>
    %415 = arith.mulf %406, %414 : vector<2x32xf32>
    %416 = arith.addf %413, %415 : vector<2x32xf32>
    %417 = math.tanh %416 : vector<2x32xf32>
    %cst_99 = arith.constant 1.000000e+00 : f32
    %418 = vector.broadcast %cst_99 : f32 to vector<2x32xf32>
    %419 = arith.subf %418, %412 : vector<2x32xf32>
    %420 = arith.mulf %419, %417 : vector<2x32xf32>
    %421 = arith.mulf %412, %368 : vector<2x32xf32>
    %422 = arith.addf %420, %421 : vector<2x32xf32>
    %c7_i32 = arith.constant 7 : i32
    %423 = arith.index_cast %c7_i32 : i32 to index
    %c0_100 = arith.constant 0 : index
    %c0_101 = arith.constant 0 : index
    %424 = vector.load %arg7[%423, %c0_100, %c0_101] : memref<8x2x128xf32, #tpu.memory_space<vmem>>, vector<1x2x128xf32>
    %425 = vector.shape_cast %424 : vector<1x2x128xf32> to vector<2x128xf32>
    %426 = arith.truncf %396 : vector<2x32xf32> to vector<2x32xbf16>
    %cst_102 = arith.constant dense<0.000000e+00> : vector<2x128xf32>
    %427 = tpu.matmul %426, %38, %cst_102 {dimension_numbers = #tpu.dot_dimension_numbers<[1], [0], [0], [1], [0, 0, 1, 1], [], []>} : vector<2x32xbf16>, vector<32x128xbf16>, vector<2x128xf32> -> vector<2x128xf32>
    %428 = arith.addf %425, %427 : vector<2x128xf32>
    %429 = vector.extract_strided_slice %428 {offsets = [0, 0], sizes = [2, 32], strides = [1, 1]} : vector<2x128xf32> to vector<2x32xf32>
    %430 = arith.negf %429 : vector<2x32xf32>
    %431 = math.exp %430 : vector<2x32xf32>
    %cst_103 = arith.constant 1.000000e+00 : f32
    %432 = vector.broadcast %cst_103 : f32 to vector<2x32xf32>
    %433 = arith.addf %432, %431 : vector<2x32xf32>
    %434 = arith.divf %432, %433 : vector<2x32xf32>
    %435 = vector.extract_strided_slice %428 {offsets = [0, 32], sizes = [2, 32], strides = [1, 1]} : vector<2x128xf32> to vector<2x32xf32>
    %436 = arith.negf %435 : vector<2x32xf32>
    %437 = math.exp %436 : vector<2x32xf32>
    %cst_104 = arith.constant 1.000000e+00 : f32
    %438 = vector.broadcast %cst_104 : f32 to vector<2x32xf32>
    %439 = arith.addf %438, %437 : vector<2x32xf32>
    %440 = arith.divf %438, %439 : vector<2x32xf32>
    %441 = vector.extract_strided_slice %428 {offsets = [0, 64], sizes = [2, 32], strides = [1, 1]} : vector<2x128xf32> to vector<2x32xf32>
    %442 = vector.extract_strided_slice %428 {offsets = [0, 96], sizes = [2, 32], strides = [1, 1]} : vector<2x128xf32> to vector<2x32xf32>
    %443 = arith.mulf %434, %442 : vector<2x32xf32>
    %444 = arith.addf %441, %443 : vector<2x32xf32>
    %445 = math.tanh %444 : vector<2x32xf32>
    %cst_105 = arith.constant 1.000000e+00 : f32
    %446 = vector.broadcast %cst_105 : f32 to vector<2x32xf32>
    %447 = arith.subf %446, %440 : vector<2x32xf32>
    %448 = arith.mulf %447, %445 : vector<2x32xf32>
    %449 = arith.mulf %440, %396 : vector<2x32xf32>
    %450 = arith.addf %448, %449 : vector<2x32xf32>
    %451 = tpu.concatenate %450, %422 in 1 : vector<2x32xf32>, vector<2x32xf32> -> vector<2x64xf32>
    %452 = arith.truncf %451 : vector<2x64xf32> to vector<2x64xbf16>
    %cst_106 = arith.constant dense<0.000000e+00> : vector<2x128xf32>
    %453 = tpu.matmul %452, %39, %cst_106 {dimension_numbers = #tpu.dot_dimension_numbers<[1], [0], [0], [1], [0, 0, 1, 1], [], []>} : vector<2x64xbf16>, vector<64x128xbf16>, vector<2x128xf32> -> vector<2x128xf32>
    %454 = arith.addf %453, %42 : vector<2x128xf32>
    %455 = vector.extract_strided_slice %454 {offsets = [0, 0], sizes = [2, 32], strides = [1, 1]} : vector<2x128xf32> to vector<2x32xf32>
    %456 = arith.negf %455 : vector<2x32xf32>
    %457 = math.exp %456 : vector<2x32xf32>
    %cst_107 = arith.constant 1.000000e+00 : f32
    %458 = vector.broadcast %cst_107 : f32 to vector<2x32xf32>
    %459 = arith.addf %458, %457 : vector<2x32xf32>
    %460 = arith.divf %458, %459 : vector<2x32xf32>
    %461 = vector.extract_strided_slice %454 {offsets = [0, 32], sizes = [2, 32], strides = [1, 1]} : vector<2x128xf32> to vector<2x32xf32>
    %462 = arith.negf %461 : vector<2x32xf32>
    %463 = math.exp %462 : vector<2x32xf32>
    %cst_108 = arith.constant 1.000000e+00 : f32
    %464 = vector.broadcast %cst_108 : f32 to vector<2x32xf32>
    %465 = arith.addf %464, %463 : vector<2x32xf32>
    %466 = arith.divf %464, %465 : vector<2x32xf32>
    %467 = vector.extract_strided_slice %454 {offsets = [0, 64], sizes = [2, 32], strides = [1, 1]} : vector<2x128xf32> to vector<2x32xf32>
    %468 = vector.extract_strided_slice %454 {offsets = [0, 96], sizes = [2, 32], strides = [1, 1]} : vector<2x128xf32> to vector<2x32xf32>
    %469 = arith.mulf %460, %468 : vector<2x32xf32>
    %470 = arith.addf %467, %469 : vector<2x32xf32>
    %471 = math.tanh %470 : vector<2x32xf32>
    %cst_109 = arith.constant 1.000000e+00 : f32
    %472 = vector.broadcast %cst_109 : f32 to vector<2x32xf32>
    %473 = arith.subf %472, %466 : vector<2x32xf32>
    %474 = arith.mulf %473, %471 : vector<2x32xf32>
    %475 = arith.mulf %466, %422 : vector<2x32xf32>
    %476 = arith.addf %474, %475 : vector<2x32xf32>
    %c8_i32 = arith.constant 8 : i32
    %c0_110 = arith.constant 0 : index
    %c0_111 = arith.constant 0 : index
    %477 = vector.load %arg6[%c0_110, %c0_111] : memref<2x32xf32, #tpu.memory_space<vmem>>, vector<2x32xf32>
    tpu.vector_store %arg6[%c0_110, %c0_111], %476 {strides = array<i32>} : memref<2x32xf32, #tpu.memory_space<vmem>>, vector<2x32xf32>,
    return
  }
}

</mosaic_0001>

<bundles_post_ra>
// kernel: tpu_custom_call.1
= control target key start
LH: loop header
LB: loop body
LE: loop exit
PB: predicated region body
PF: predicated region fallthrough
CT: control target
= control target key end

     0   :  { %11 = vsyncpa [#allocation4], 0  ;;  %s1686_s0 = inlined_call_operand.vmem [shape: bf16[16,5], index: 0, kind: input, shape index: {}]   ;;  %s1687_s1 = inlined_call_operand.vmem [shape: bf16[5,128], index: 1, kind: input, shape index: {}]   ;;  %s1688_s2 = inlined_call_operand.hbm [shape: bf16[32,128], index: 2, kind: input, shape index: {}]   ;;  %s1689_s3 = inlined_call_operand.vmem [shape: f32[1,128], index: 3, kind: input, shape index: {}]   ;;  %s1690_s4 = inlined_call_operand.hbm [shape: bf16[64,128], index: 4, kind: input, shape index: {}]   ;;  %s1691_s5 = inlined_call_operand.vmem [shape: f32[1,128], index: 5, kind: input, shape index: {}]   ;;  %s1692_s6 = inlined_call_operand.hbm [shape: f32[2,32], index: 6, kind: output, shape index: {}]  }
   0x1   :  { %12 = vsyncpa [#allocation7], 0 }
   0x2   :  { %13 = vsyncpa [#allocation5], 0  ;;  %s22_s23 = sshll.u32 %s1688_s2, 4  ;;  %s1396_s24 = smov [#allocation3]   ;;  %s23_s23 = int_to_ptr.hbm [resolvable:$true] %s22_s23 }
   0x3   :  { %s24_s25 = sshll.u32 %s1396_s24, 4  ;;  %s37_s28 = sshll.u32 %s1690_s4, 4  ;;  %s25_s25 = int_to_ptr.vmem [resolvable:$true] %s24_s25  ;;  %s38_s28 = int_to_ptr.hbm [resolvable:$true] %s37_s28 }
   0x4   :  { %s1397_s29 = smov 64   ;;  %s1398_s30 = smov 4  }
   0x5   :  { %30 = dma.hbm_to_vmem [thread:$0]  %s23_s23, 256, %s25_s25, [#allocation4], %s1397_s29, %s1397_s29, %s1398_s30  }
   0x6   :  { %s1399_s7 = smov [#allocation6]  }
   0x7   :  { %s39_s8 = sshll.u32 %s1399_s7, 4  ;;  %s40_s8 = int_to_ptr.vmem [resolvable:$true] %s39_s8 }
   0x8   :  { %45 = dma.hbm_to_vmem [thread:$0]  %s38_s28, 512, %s40_s8, [#allocation7], %s1397_s29, %s1397_s29, %s1398_s30  }
   0x9   :  { %1390 = dma.done.wait [#allocation4], 256  }
   0xa   :  { %1391 = vsyncadd [#allocation4], 4294967040 }
   0xb   :  { %1392 = dma.done.wait [#allocation7], 512  }
   0xc   :  { %1393 = vsyncadd [#allocation7], 4294966784  ;;  %vm73_vm0 = vcmask 1041408   ;;  %vm74_vm1 = vcmask 1042432   ;;  %v1400_v0 = vmov 65535   ;;  %v1453_v4 = vld [vmem:[#allocation3 + $0x8] sm:$0xff] }
   0xd   :  { %v75_v1 = vsel %vm73_vm0, 4294967295, %v1400_v0  ;;  %v59_v3 = vld [vmem:[%s1687_s1] sm:$0x7]  ;;  %148 = vmatpush.bf16.msra.mxu1 %v1453_v4  ;;  %v1459_v7 = vld [vmem:[#allocation3] sm:$0xff]  ;;  %293 = vmatpush.bf16.msra.mxu3 %v1453_v4  ;;  %vm69_vm2 = vcmask 39936   ;;  %v1401_v8 = vmov 0  }
   0xe   :  { %v76_v2 = vsel %vm74_vm1, %v75_v1, 0  ;;  %v1203_v6 = vld [vmem:[%s1686_s0] sm:$0xff]  ;;  %s1402_s11 = smov 32   ;;  %v1474_v36 = vld [vmem:[#allocation6 + $0x18] sm:$0xff]  ;;  %v1486_v43 = vld [vmem:[#allocation6 + $0x10] sm:$0xff]  ;;  %vm138_vm7 = vcmask 261120  }
   0xf   :  { %v78_v5 = vand.u32 %v76_v2, %v59_v3  ;;  %v1219_v9 = vld [vmem:[%s1689_s3] ss:$0 sm:$0xff]  ;;  %s1403_s3 = smov 96   ;;  %232 = vmatpush.bf16.msra.mxu2 %v1474_v36  ;;  %v1489_v44 = vld [vmem:[#allocation6 + $0x8] sm:$0xff]  ;;  %vm224_vm8 = vcmask 523264   ;;  %s1132_s19 = sshll.u32 %s1692_s6, 4  ;;  %s1133_s19 = int_to_ptr.hbm [resolvable:$true] %s1132_s19 }
  0x10   :  { %v1496_v45 = vld [vmem:[#allocation6] sm:$0xff] }
  0x11   :  { %87 = vmatpush.bf16.msra.mxu0 %v78_v5  ;;  %149 = vmatpush.bf16.msra.mxu1 %v1459_v7 }
  0x12   :  { %294 = vmatpush.bf16.msra.mxu3 %v1459_v7 }
  0x13   :  { %233 = vmatpush.bf16.msra.mxu2 %v1486_v43 }
  0x14   :  { %1147 = vmatmul.msk.bf16.vlgmr.msra.gmra.mxu0 %vm69_vm2, %v1203_v6  ;;  %150 = vmatmul.bf16.vlgmr.msra.gmra.mxu1 %v1401_v8 }
  0x15   :  { %413 = vmatpush.bf16.msrb.mxu1 %v1453_v4  ;;  %352 = vmatpush.bf16.msrb.mxu0 %v1474_v36 }
  0x16   :  { %472 = vmatpush.bf16.msrb.mxu3 %v1474_v36 }
  0x17   :  { %234 = vmatpush.bf16.msra.mxu2 %v1489_v44 }
  0x19   :  { %414 = vmatpush.bf16.msrb.mxu1 %v1459_v7  ;;  %353 = vmatpush.bf16.msrb.mxu0 %v1486_v43 }
  0x1a   :  { %473 = vmatpush.bf16.msrb.mxu3 %v1486_v43 }
  0x1b   :  { %235 = vmatpush.bf16.msra.mxu2 %v1496_v45 }
  0x1d   :  { %653 = vmatpush.bf16.msra.mxu1 %v1453_v4  ;;  %354 = vmatpush.bf16.msrb.mxu0 %v1489_v44 }
  0x1e   :  { %474 = vmatpush.bf16.msrb.mxu3 %v1489_v44 }
  0x1f   :  { %533 = vmatpush.bf16.msrb.mxu2 %v1453_v4 }
  0x21   :  { %654 = vmatpush.bf16.msra.mxu1 %v1459_v7  ;;  %355 = vmatpush.bf16.msrb.mxu0 %v1496_v45 }
  0x22   :  { %475 = vmatpush.bf16.msrb.mxu3 %v1496_v45 }
  0x23   :  { %534 = vmatpush.bf16.msrb.mxu2 %v1459_v7 }
  0x25   :  { %592 = vmatpush.bf16.msra.mxu0 %v1474_v36 }
  0x29   :  { %593 = vmatpush.bf16.msra.mxu0 %v1486_v43 }
  0x2d   :  { %594 = vmatpush.bf16.msra.mxu0 %v1489_v44 }
  0x31   :  { %595 = vmatpush.bf16.msra.mxu0 %v1496_v45 }
  0x91   :  { %v89_v10 = vpop.f32.mrf.mxu0  ;;  %v151_v12 = vpop.f32.mrf.mxu1 }
  0x92   :  { %v90_v11 = vadd.f32 %v1219_v9, %v89_v10 }
  0x94   :  { %94 = vst [vmem:[#allocation2] sm:$0xf] %v90_v11  }
  0x95   :  { %98 = vst [vmem:[#allocation2] sm:$0xf0] %v90_v11  }
  0x99   :  { %v91_v13 = vpop.f32.mrf.mxu0  ;;  %v153_v17 = vpop.f32.mrf.mxu1 }
  0x9a   :  { %v92_v14 = vadd.f32 %v1219_v9, %v91_v13 }
  0x9b   :  { %v125_v15 = vld [vmem:[#allocation2] sm:$0x3]  ;;  %v279_v50 = vld [vmem:[#allocation2 + $0x2] sm:$0x3] }
  0x9c   :  { %v155_v16 = vadd.f32 %v151_v12, %v125_v15  ;;  %102 = vst [vmem:[#allocation2 + $0x8] sm:$0xf] %v92_v14   ;;  %v1522_v12 = vld [vmem:[%s1691_s5] ss:$0 sm:$0xff] }
  0x9d   :  { %106 = vst [vmem:[#allocation2 + $0x8] sm:$0xf0] %v92_v14  }
  0x9e   :  { %176 = vrot.lane.b32.xlu0 %v155_v16, %s1402_s11  ;;  %v1156_v18 = vmul.f32 -1.442695, %v155_v16 }
  0xa0   :  { %1221 = vpow2.f32 %v1156_v18 }
  0xa6   :  { %v1222_v19 = vpop.eup %1221 }
  0xa7   :  { %v159_v20 = vadd.f32 1.0, %v1222_v19 }
  0xa9   :  { %1223 = vrcp.f32 %v159_v20  ;;  %v171_v26 = vand.u32 2147483648, %v159_v20  ;;  %vm165_vm4 = vweird.f32 %v159_v20  ;;  %v169_v27 = vand.u32 2147483647, %v159_v20 }
  0xab   :  { %v172_v29 = vor.u32 1.1754944e-38, %v171_v26  ;;  %vm170_vm6 = vcmp.eq.f32.partialorder %v169_v27, 8.507059e+37 }
  0xaf   :  { %v1224_v21 = vpop.eup %1223 }
  0xb0   :  { %v161_v22 = vmul.f32 %v1224_v21, %v159_v20  ;;  %vm166_vm3 = vweird.f32 %v1224_v21 }
  0xb1   :  { %vm167_vm5 = vmor %vm165_vm4, %vm166_vm3 }
  0xb2   :  { %v162_v23 = vsub.f32 1.0, %v161_v22 }
  0xb4   :  { %v163_v24 = vmul.f32 %v1224_v21, %v162_v23 }
  0xb6   :  { %v164_v25 = vadd.f32 %v1224_v21, %v163_v24 }
  0xb8   :  { %v168_v28 = vsel %vm167_vm5, %v1224_v21, %v164_v25 }
  0xb9   :  { %v173_v31 = vsel %vm170_vm6, %v172_v29, %v168_v28 }
  0xba   :  { %v186_v37 = vsub.f32 1.0, %v173_v31  ;;  %v192_v39 = vmul.f32 0.0, %v173_v31 }
 0x110   :  { %v177_v30 = vpop.permute.xlu0 %176 }
 0x111   :  { %v179_v32 = vmul.f32 %v177_v30, %v173_v31 }
 0x113   :  { %181 = vrot.lane.b32.xlu0 %v179_v32, %s1397_s29 }
 0x185   :  { %v182_v33 = vpop.permute.xlu0 %181 }
 0x186   :  { %v184_v34 = vadd.f32 %v182_v33, %v155_v16 }
 0x188   :  { %1225 = vtanh.f32 %v184_v34 }
 0x18e   :  { %v1226_v35 = vpop.eup %1225 }
 0x18f   :  { %188 = vrot.lane.b32.xlu1 %v1226_v35, %s1403_s3 }
 0x201   :  { %v189_v38 = vpop.permute.xlu1 %188 }
 0x202   :  { %v191_v40 = vmul.f32 %v189_v38, %v186_v37 }
 0x204   :  { %v1479_v41 = vadd.f32 %v192_v39, %v191_v40  ;;  %v399_v39 = vld [vmem:[#allocation2 + $0x4] sm:$0x3] }
 0x206   :  { %v280_v42 = vpack.c.bf16 %v1479_v41, %v1479_v41 }
 0x208   :  { %282 = vrot.lane.b32.xlu1 %v280_v42, %s1403_s3 }
 0x210   :  { %195 = vrot.lane.b32.xlu1 %v1479_v41, %s1403_s3 }
 0x27a   :  { %v283_v46 = vpop.permute.xlu1 %282 }
 0x27b   :  { %1175 = vmatmul.msk.bf16.vlgmr.msra.gmra.mxu3 %vm138_vm7, %v283_v46 }
 0x27c   :  { %712 = vmatpush.bf16.msra.mxu3 %v1474_v36 }
 0x280   :  { %713 = vmatpush.bf16.msra.mxu3 %v1486_v43 }
 0x282   :  { %v196_v47 = vpop.permute.xlu1 %195 }
 0x283   :  { %v198_v48 = vsel %vm138_vm7, %v196_v47, 0.0 }
 0x284   :  { %v199_v49 = vpack.c.bf16 %v198_v48, %v198_v48  ;;  %714 = vmatpush.bf16.msra.mxu3 %v1489_v44 }
 0x286   :  { %1173 = vmatmul.msk.bf16.vlgmr.msra.gmra.mxu2 %vm224_vm8, %v199_v49 }
 0x287   :  { %773 = vmatpush.bf16.msra.mxu2 %v1453_v4 }
 0x288   :  { %715 = vmatpush.bf16.msra.mxu3 %v1496_v45 }
 0x28b   :  { %774 = vmatpush.bf16.msra.mxu2 %v1459_v7 }
 0x2fe   :  { %v296_v51 = vpop.f32.mrf.mxu3 }
 0x2ff   :  { %v300_v52 = vadd.f32 %v296_v51, %v279_v50 }
 0x301   :  { %321 = vrot.lane.b32.xlu2 %v300_v52, %s1402_s11  ;;  %v1176_v56 = vmul.f32 -1.442695, %v300_v52 }
 0x303   :  { %1227 = vpow2.f32 %v1176_v56 }
 0x306   :  { %v298_v53 = vpop.f32.mrf.mxu3 }
 0x309   :  { %v237_v54 = vpop.f32.mrf.mxu2  ;;  %v1228_v57 = vpop.eup %1227 }
 0x30a   :  { %v304_v58 = vadd.f32 1.0, %v1228_v57  ;;  %v238_v13 = vadd.f32 %v1522_v12, %v237_v54 }
 0x30c   :  { %1229 = vrcp.f32 %v304_v58  ;;  %v316_v0 = vand.u32 2147483648, %v304_v58  ;;  %vm310_vm10 = vweird.f32 %v304_v58  ;;  %v314_v1 = vand.u32 2147483647, %v304_v58 }
 0x30d   :  { %v1174_v14 = vmul.f32 -1.442695, %v238_v13 }
 0x30e   :  { %v317_v3 = vor.u32 1.1754944e-38, %v316_v0  ;;  %vm315_vm12 = vcmp.eq.f32.partialorder %v314_v1, 8.507059e+37 }
 0x311   :  { %v239_v55 = vpop.f32.mrf.mxu2 }
 0x312   :  { %v1230_v59 = vpop.eup %1229 }
 0x313   :  { %v306_v60 = vmul.f32 %v1230_v59, %v304_v58  ;;  %vm311_vm9 = vweird.f32 %v1230_v59 }
 0x314   :  { %vm312_vm11 = vmor %vm310_vm10, %vm311_vm9 }
 0x315   :  { %v307_v61 = vsub.f32 1.0, %v306_v60 }
 0x317   :  { %v308_v62 = vmul.f32 %v1230_v59, %v307_v61 }
 0x319   :  { %v309_v63 = vadd.f32 %v1230_v59, %v308_v62 }
 0x31b   :  { %v313_v2 = vsel %vm312_vm11, %v1230_v59, %v309_v63 }
 0x31c   :  { %v318_v6 = vsel %vm315_vm12, %v317_v3, %v313_v2 }
 0x31d   :  { %v331_v20 = vsub.f32 1.0, %v318_v6  ;;  %v337_v22 = vmul.f32 %v318_v6, %v1479_v41 }
 0x35b   :  { %v322_v5 = vpop.permute.xlu2 %321 }
 0x35c   :  { %v324_v8 = vmul.f32 %v322_v5, %v318_v6 }
 0x35e   :  { %326 = vrot.lane.b32.xlu2 %v324_v8, %s1397_s29 }
 0x3b8   :  { %v327_v9 = vpop.permute.xlu2 %326 }
 0x3b9   :  { %v329_v10 = vadd.f32 %v327_v9, %v300_v52 }
 0x3bb   :  { %1231 = vtanh.f32 %v329_v10 }
 0x3bc   :  { %1233 = vpow2.f32 %v1174_v14 }
 0x3c1   :  { %v1232_v11 = vpop.eup %1231 }
 0x3c2   :  { %333 = vrot.lane.b32.xlu0 %v1232_v11, %s1403_s3  ;;  %v1234_v15 = vpop.eup %1233 }
 0x3c3   :  { %v244_v16 = vadd.f32 1.0, %v1234_v15 }
 0x3c5   :  { %1235 = vrcp.f32 %v244_v16  ;;  %v256_v28 = vand.u32 2147483648, %v244_v16  ;;  %vm250_vm14 = vweird.f32 %v244_v16  ;;  %v254_v29 = vand.u32 2147483647, %v244_v16 }
 0x3c7   :  { %v257_v32 = vor.u32 1.1754944e-38, %v256_v28  ;;  %vm255_vm0 = vcmp.eq.f32.partialorder %v254_v29, 8.507059e+37 }
 0x3ca   :  { %261 = vrot.lane.b32.xlu0 %v238_v13, %s1402_s11 }
 0x3cb   :  { %v1236_v17 = vpop.eup %1235 }
 0x3cc   :  { %v246_v18 = vmul.f32 %v1236_v17, %v244_v16  ;;  %vm251_vm13 = vweird.f32 %v1236_v17 }
 0x3cd   :  { %vm252_vm15 = vmor %vm250_vm14, %vm251_vm13 }
 0x3ce   :  { %v247_v19 = vsub.f32 1.0, %v246_v18 }
 0x3d0   :  { %v248_v24 = vmul.f32 %v1236_v17, %v247_v19 }
 0x3d2   :  { %v249_v27 = vadd.f32 %v1236_v17, %v248_v24 }
 0x3d4   :  { %v253_v30 = vsel %vm252_vm15, %v1236_v17, %v249_v27 }
 0x3d5   :  { %v258_v33 = vsel %vm255_vm0, %v257_v32, %v253_v30 }
 0x3d6   :  { %v271_v62 = vsub.f32 1.0, %v258_v33  ;;  %v277_v0 = vmul.f32 0.0, %v258_v33 }
 0x434   :  { %v334_v21 = vpop.permute.xlu0 %333 }
 0x435   :  { %v336_v23 = vmul.f32 %v334_v21, %v331_v20 }
 0x437   :  { %v1527_v25 = vadd.f32 %v337_v22, %v336_v23 }
 0x439   :  { %v400_v26 = vpack.c.bf16 %v1527_v25, %v1527_v25 }
 0x43b   :  { %402 = vrot.lane.b32.xlu2 %v400_v26, %s1403_s3 }
 0x43c   :  { %v262_v31 = vpop.permute.xlu0 %261 }
 0x43d   :  { %v264_v34 = vmul.f32 %v262_v31, %v258_v33 }
 0x443   :  { %266 = vrot.lane.b32.xlu2 %v264_v34, %s1397_s29 }
 0x44b   :  { %340 = vrot.lane.b32.xlu2 %v1527_v25, %s1403_s3 }
 0x495   :  { %v403_v35 = vpop.permute.xlu2 %402 }
 0x496   :  { %1179 = vmatmul.msk.bf16.vlgmr.msrb.gmra.mxu1 %vm138_vm7, %v403_v35 }
 0x497   :  { %893 = vmatpush.bf16.msrb.mxu1 %v1453_v4 }
 0x49b   :  { %894 = vmatpush.bf16.msrb.mxu1 %v1459_v7 }
 0x49d   :  { %v267_v37 = vpop.permute.xlu2 %266 }
 0x49e   :  { %v269_v38 = vadd.f32 %v267_v37, %v238_v13 }
 0x4a0   :  { %1237 = vtanh.f32 %v269_v38 }
 0x4a5   :  { %v341_v3 = vpop.permute.xlu2 %340 }
 0x4a6   :  { %v1238_v46 = vpop.eup %1237 }
 0x513   :  { %v416_v40 = vpop.f32.mrf.mxu1 }
 0x514   :  { %v420_v41 = vadd.f32 %v416_v40, %v399_v39 }
 0x516   :  { %441 = vrot.lane.b32.xlu1 %v420_v41, %s1402_s11  ;;  %v1180_v47 = vmul.f32 -1.442695, %v420_v41 }
 0x518   :  { %1239 = vpow2.f32 %v1180_v47 }
 0x51b   :  { %v418_v42 = vpop.f32.mrf.mxu1 }
 0x51e   :  { %273 = vrot.lane.b32.xlu1 %v1238_v46, %s1403_s3  ;;  %v1240_v48 = vpop.eup %1239 }
 0x51f   :  { %v424_v49 = vadd.f32 1.0, %v1240_v48 }
 0x521   :  { %1241 = vrcp.f32 %v424_v49  ;;  %v436_v55 = vand.u32 2147483648, %v424_v49  ;;  %vm430_vm2 = vweird.f32 %v424_v49  ;;  %v434_v56 = vand.u32 2147483647, %v424_v49 }
 0x523   :  { %v437_v58 = vor.u32 1.1754944e-38, %v436_v55  ;;  %vm435_vm4 = vcmp.eq.f32.partialorder %v434_v56, 8.507059e+37 }
 0x527   :  { %v1242_v50 = vpop.eup %1241 }
 0x528   :  { %v426_v51 = vmul.f32 %v1242_v50, %v424_v49  ;;  %vm431_vm1 = vweird.f32 %v1242_v50 }
 0x529   :  { %vm432_vm3 = vmor %vm430_vm2, %vm431_vm1 }
 0x52a   :  { %v427_v52 = vsub.f32 1.0, %v426_v51 }
 0x52c   :  { %v428_v53 = vmul.f32 %v1242_v50, %v427_v52 }
 0x52e   :  { %v429_v54 = vadd.f32 %v1242_v50, %v428_v53 }
 0x530   :  { %v433_v57 = vsel %vm432_vm3, %v1242_v50, %v429_v54 }
 0x531   :  { %v438_v59 = vsel %vm435_vm4, %v437_v58, %v433_v57 }
 0x532   :  { %v451_v31 = vsub.f32 1.0, %v438_v59  ;;  %v457_v33 = vmul.f32 %v438_v59, %v1527_v25 }
 0x588   :  { %v442_v60 = vpop.permute.xlu1 %441 }
 0x589   :  { %v444_v61 = vmul.f32 %v442_v60, %v438_v59 }
 0x58b   :  { %446 = vrot.lane.b32.xlu0 %v444_v61, %s1397_s29 }
 0x590   :  { %v274_v63 = vpop.permute.xlu1 %273 }
 0x591   :  { %v276_v1 = vmul.f32 %v274_v63, %v271_v62 }
 0x593   :  { %v278_v2 = vadd.f32 %v277_v0, %v276_v1 }
 0x595   :  { %v343_v5 = vsel %vm138_vm7, %v341_v3, %v278_v2 }
 0x596   :  { %v344_v6 = vpack.c.bf16 %v343_v5, %v343_v5 }
 0x598   :  { %1177 = vmatmul.msk.bf16.vlgmr.msrb.gmra.mxu0 %vm224_vm8, %v344_v6 }
 0x599   :  { %832 = vmatpush.bf16.msrb.mxu0 %v1474_v36 }
 0x59d   :  { %833 = vmatpush.bf16.msrb.mxu0 %v1486_v43 }
 0x5a1   :  { %834 = vmatpush.bf16.msrb.mxu0 %v1489_v44 }
 0x5a5   :  { %835 = vmatpush.bf16.msrb.mxu0 %v1496_v45 }
 0x5fd   :  { %v447_v8 = vpop.permute.xlu0 %446 }
 0x5fe   :  { %v449_v9 = vadd.f32 %v447_v8, %v420_v41 }
 0x600   :  { %1243 = vtanh.f32 %v449_v9 }
 0x606   :  { %v1244_v10 = vpop.eup %1243 }
 0x607   :  { %453 = vrot.lane.b32.xlu0 %v1244_v10, %s1403_s3 }
 0x615   :  { %v357_v11 = vpop.f32.mrf.mxu0 }
 0x616   :  { %v358_v13 = vadd.f32 %v1522_v12, %v357_v11 }
 0x618   :  { %381 = vrot.lane.b32.xlu2 %v358_v13, %s1402_s11  ;;  %v1178_v15 = vmul.f32 -1.442695, %v358_v13 }
 0x61a   :  { %1245 = vpow2.f32 %v1178_v15 }
 0x61d   :  { %v359_v14 = vpop.f32.mrf.mxu0 }
 0x620   :  { %v1246_v16 = vpop.eup %1245 }
 0x621   :  { %v364_v17 = vadd.f32 1.0, %v1246_v16 }
 0x623   :  { %1247 = vrcp.f32 %v364_v17  ;;  %v376_v23 = vand.u32 2147483648, %v364_v17  ;;  %vm370_vm6 = vweird.f32 %v364_v17  ;;  %v374_v24 = vand.u32 2147483647, %v364_v17 }
 0x625   :  { %v377_v27 = vor.u32 1.1754944e-38, %v376_v23  ;;  %vm375_vm10 = vcmp.eq.f32.partialorder %v374_v24, 8.507059e+37 }
 0x629   :  { %v1248_v18 = vpop.eup %1247 }
 0x62a   :  { %v366_v19 = vmul.f32 %v1248_v18, %v364_v17  ;;  %vm371_vm5 = vweird.f32 %v1248_v18 }
 0x62b   :  { %vm372_vm9 = vmor %vm370_vm6, %vm371_vm5 }
 0x62c   :  { %v367_v20 = vsub.f32 1.0, %v366_v19 }
 0x62e   :  { %v368_v21 = vmul.f32 %v1248_v18, %v367_v20 }
 0x630   :  { %v369_v22 = vadd.f32 %v1248_v18, %v368_v21 }
 0x632   :  { %v373_v26 = vsel %vm372_vm9, %v1248_v18, %v369_v22 }
 0x633   :  { %v378_v29 = vsel %vm375_vm10, %v377_v27, %v373_v26 }
 0x634   :  { %v391_v25 = vsub.f32 1.0, %v378_v29  ;;  %v397_v46 = vmul.f32 %v378_v29, %v278_v2 }
 0x672   :  { %v382_v28 = vpop.permute.xlu2 %381 }
 0x673   :  { %v384_v30 = vmul.f32 %v382_v28, %v378_v29 }
 0x675   :  { %386 = vrot.lane.b32.xlu0 %v384_v30, %s1397_s29 }
 0x679   :  { %v454_v32 = vpop.permute.xlu0 %453 }
 0x67a   :  { %v456_v34 = vmul.f32 %v454_v32, %v451_v31 }
 0x67c   :  { %v1552_v35 = vadd.f32 %v457_v33, %v456_v34 }
 0x67e   :  { %460 = vrot.lane.b32.xlu0 %v1552_v35, %s1403_s3  ;;  %v520_v37 = vpack.c.bf16 %v1552_v35, %v1552_v35 }
 0x680   :  { %522 = vrot.lane.b32.xlu1 %v520_v37, %s1403_s3 }
 0x6e7   :  { %v387_v38 = vpop.permute.xlu0 %386 }
 0x6e8   :  { %v389_v39 = vadd.f32 %v387_v38, %v358_v13 }
 0x6ea   :  { %1249 = vtanh.f32 %v389_v39 }
 0x6f0   :  { %v1250_v40 = vpop.eup %1249  ;;  %v461_v49 = vpop.permute.xlu0 %460 }
 0x6f1   :  { %393 = vrot.lane.b32.xlu2 %v1250_v40, %s1403_s3 }
 0x6f2   :  { %v523_v41 = vpop.permute.xlu1 %522 }
 0x6f3   :  { %1183 = vmatmul.msk.bf16.vlgmr.msrb.gmra.mxu2 %vm138_vm7, %v523_v41 }
 0x6f4   :  { %1013 = vmatpush.bf16.msrb.mxu2 %v1453_v4  ;;  %v519_v4 = vld [vmem:[#allocation2 + $0x6] sm:$0x3] }
 0x6f8   :  { %1014 = vmatpush.bf16.msrb.mxu2 %v1459_v7 }
 0x74b   :  { %v394_v42 = vpop.permute.xlu2 %393 }
 0x74c   :  { %v396_v47 = vmul.f32 %v394_v42, %v391_v25 }
 0x74e   :  { %v1563_v48 = vadd.f32 %v397_v46, %v396_v47 }
 0x750   :  { %v463_v50 = vsel %vm138_vm7, %v461_v49, %v1563_v48 }
 0x751   :  { %v464_v51 = vpack.c.bf16 %v463_v50, %v463_v50 }
 0x753   :  { %1181 = vmatmul.msk.bf16.vlgmr.msrb.gmra.mxu3 %vm224_vm8, %v464_v51 }
 0x754   :  { %952 = vmatpush.bf16.msrb.mxu3 %v1474_v36 }
 0x758   :  { %953 = vmatpush.bf16.msrb.mxu3 %v1486_v43 }
 0x75c   :  { %954 = vmatpush.bf16.msrb.mxu3 %v1489_v44 }
 0x760   :  { %955 = vmatpush.bf16.msrb.mxu3 %v1496_v45 }
 0x776   :  { %v536_v7 = vpop.f32.mrf.mxu2 }
 0x777   :  { %v540_v52 = vadd.f32 %v536_v7, %v519_v4  ;;  %v639_v4 = vld [vmem:[#allocation2 + $0x8] sm:$0x3] }
 0x779   :  { %561 = vrot.lane.b32.xlu1 %v540_v52, %s1402_s11  ;;  %v1184_v54 = vmul.f32 -1.442695, %v540_v52 }
 0x77b   :  { %1251 = vpow2.f32 %v1184_v54 }
 0x77e   :  { %v538_v53 = vpop.f32.mrf.mxu2 }
 0x781   :  { %v1252_v55 = vpop.eup %1251 }
 0x782   :  { %v544_v56 = vadd.f32 1.0, %v1252_v55 }
 0x784   :  { %1253 = vrcp.f32 %v544_v56  ;;  %v556_v0 = vand.u32 2147483648, %v544_v56  ;;  %vm550_vm12 = vweird.f32 %v544_v56  ;;  %v554_v1 = vand.u32 2147483647, %v544_v56 }
 0x786   :  { %v557_v3 = vor.u32 1.1754944e-38, %v556_v0  ;;  %vm555_vm14 = vcmp.eq.f32.partialorder %v554_v1, 8.507059e+37 }
 0x78a   :  { %v1254_v57 = vpop.eup %1253 }
 0x78b   :  { %v546_v59 = vmul.f32 %v1254_v57, %v544_v56  ;;  %vm551_vm11 = vweird.f32 %v1254_v57 }
 0x78c   :  { %vm552_vm13 = vmor %vm550_vm12, %vm551_vm11 }
 0x78d   :  { %v547_v60 = vsub.f32 1.0, %v546_v59 }
 0x78f   :  { %v548_v62 = vmul.f32 %v1254_v57, %v547_v60 }
 0x791   :  { %v549_v63 = vadd.f32 %v1254_v57, %v548_v62 }
 0x793   :  { %v553_v2 = vsel %vm552_vm13, %v1254_v57, %v549_v63 }
 0x794   :  { %v558_v6 = vsel %vm555_vm14, %v557_v3, %v553_v2 }
 0x795   :  { %v571_v30 = vsub.f32 1.0, %v558_v6  ;;  %v577_v32 = vmul.f32 %v558_v6, %v1552_v35 }
 0x7d6   :  { %v477_v58 = vpop.f32.mrf.mxu3 }
 0x7d7   :  { %v478_v9 = vadd.f32 %v1522_v12, %v477_v58 }
 0x7d9   :  { %v1182_v10 = vmul.f32 -1.442695, %v478_v9 }
 0x7db   :  { %1255 = vpow2.f32 %v1182_v10 }
 0x7de   :  { %v479_v61 = vpop.f32.mrf.mxu3 }
 0x7e1   :  { %v1256_v11 = vpop.eup %1255 }
 0x7e2   :  { %v484_v13 = vadd.f32 1.0, %v1256_v11 }
 0x7e4   :  { %1257 = vrcp.f32 %v484_v13  ;;  %v496_v22 = vand.u32 2147483648, %v484_v13  ;;  %vm490_vm0 = vweird.f32 %v484_v13  ;;  %v494_v23 = vand.u32 2147483647, %v484_v13 }
 0x7e6   :  { %v497_v26 = vor.u32 1.1754944e-38, %v496_v22  ;;  %vm495_vm2 = vcmp.eq.f32.partialorder %v494_v23, 8.507059e+37 }
 0x7ea   :  { %v1258_v14 = vpop.eup %1257 }
 0x7eb   :  { %v562_v5 = vpop.permute.xlu1 %561  ;;  %v486_v15 = vmul.f32 %v1258_v14, %v484_v13  ;;  %vm491_vm15 = vweird.f32 %v1258_v14 }
 0x7ec   :  { %v564_v8 = vmul.f32 %v562_v5, %v558_v6  ;;  %vm492_vm1 = vmor %vm490_vm0, %vm491_vm15 }
 0x7ed   :  { %v487_v17 = vsub.f32 1.0, %v486_v15 }
 0x7ee   :  { %566 = vrot.lane.b32.xlu1 %v564_v8, %s1397_s29 }
 0x7ef   :  { %v488_v19 = vmul.f32 %v1258_v14, %v487_v17 }
 0x7f1   :  { %v489_v20 = vadd.f32 %v1258_v14, %v488_v19 }
 0x7f3   :  { %v493_v24 = vsel %vm492_vm1, %v1258_v14, %v489_v20 }
 0x7f4   :  { %v498_v28 = vsel %vm495_vm2, %v497_v26, %v493_v24 }
 0x7f5   :  { %v511_v35 = vsub.f32 1.0, %v498_v28  ;;  %v517_v42 = vmul.f32 %v498_v28, %v1563_v48 }
 0x7f6   :  { %501 = vrot.lane.b32.xlu1 %v478_v9, %s1402_s11 }
 0x860   :  { %v567_v16 = vpop.permute.xlu1 %566 }
 0x861   :  { %v569_v18 = vadd.f32 %v567_v16, %v540_v52 }
 0x863   :  { %1259 = vtanh.f32 %v569_v18 }
 0x868   :  { %v502_v27 = vpop.permute.xlu1 %501 }
 0x869   :  { %v1260_v21 = vpop.eup %1259  ;;  %v504_v29 = vmul.f32 %v502_v27, %v498_v28 }
 0x86a   :  { %573 = vrot.lane.b32.xlu2 %v1260_v21, %s1403_s3 }
 0x872   :  { %506 = vrot.lane.b32.xlu2 %v504_v29, %s1397_s29 }
 0x8c4   :  { %v574_v31 = vpop.permute.xlu2 %573 }
 0x8c5   :  { %v576_v33 = vmul.f32 %v574_v31, %v571_v30 }
 0x8c7   :  { %v1579_v34 = vadd.f32 %v577_v32, %v576_v33 }
 0x8c9   :  { %580 = vrot.lane.b32.xlu1 %v1579_v34, %s1403_s3  ;;  %v640_v37 = vpack.c.bf16 %v1579_v34, %v1579_v34 }
 0x8cb   :  { %642 = vrot.lane.b32.xlu0 %v640_v37, %s1403_s3 }
 0x8cc   :  { %v507_v38 = vpop.permute.xlu2 %506 }
 0x8cd   :  { %v509_v39 = vadd.f32 %v507_v38, %v478_v9 }
 0x8cf   :  { %1261 = vtanh.f32 %v509_v39 }
 0x8d5   :  { %v1262_v40 = vpop.eup %1261 }
 0x8d6   :  { %513 = vrot.lane.b32.xlu0 %v1262_v40, %s1403_s3 }
 0x93b   :  { %v581_v49 = vpop.permute.xlu1 %580 }
 0x93d   :  { %v643_v41 = vpop.permute.xlu0 %642 }
 0x93e   :  { %1187 = vmatmul.msk.bf16.vlgmr.msra.gmra.mxu1 %vm138_vm7, %v643_v41 }
 0x948   :  { %v514_v25 = vpop.permute.xlu0 %513 }
 0x949   :  { %v516_v46 = vmul.f32 %v514_v25, %v511_v35 }
 0x94b   :  { %v1589_v47 = vadd.f32 %v517_v42, %v516_v46  ;;  %v759_v46 = vld [vmem:[#allocation2 + $0xa] sm:$0x3] }
 0x94d   :  { %v583_v50 = vsel %vm138_vm7, %v581_v49, %v1589_v47 }
 0x94e   :  { %v584_v51 = vpack.c.bf16 %v583_v50, %v583_v50 }
 0x950   :  { %1185 = vmatmul.msk.bf16.vlgmr.msra.gmra.mxu0 %vm224_vm8, %v584_v51 }
 0x951   :  { %1072 = vmatpush.bf16.msra.mxu0 %v1474_v36 }
 0x955   :  { %1073 = vmatpush.bf16.msra.mxu0 %v1486_v43 }
 0x959   :  { %1074 = vmatpush.bf16.msra.mxu0 %v1489_v44 }
 0x95d   :  { %1075 = vmatpush.bf16.msra.mxu0 %v1496_v45 }
 0x9bb   :  { %v656_v48 = vpop.f32.mrf.mxu1 }
 0x9bc   :  { %v660_v7 = vadd.f32 %v656_v48, %v639_v4 }
 0x9be   :  { %681 = vrot.lane.b32.xlu2 %v660_v7, %s1402_s11  ;;  %v1188_v55 = vmul.f32 -1.442695, %v660_v7 }
 0x9c0   :  { %1263 = vpow2.f32 %v1188_v55 }
 0x9c3   :  { %v658_v52 = vpop.f32.mrf.mxu1 }
 0x9c6   :  { %v1264_v56 = vpop.eup %1263 }
 0x9c7   :  { %v664_v57 = vadd.f32 1.0, %v1264_v56 }
 0x9c9   :  { %1265 = vrcp.f32 %v664_v57  ;;  %v676_v45 = vand.u32 2147483648, %v664_v57  ;;  %vm670_vm4 = vweird.f32 %v664_v57  ;;  %v674_v60 = vand.u32 2147483647, %v664_v57 }
 0x9cb   :  { %v677_v62 = vor.u32 1.1754944e-38, %v676_v45  ;;  %vm675_vm6 = vcmp.eq.f32.partialorder %v674_v60, 8.507059e+37 }
 0x9cd   :  { %v597_v53 = vpop.f32.mrf.mxu0 }
 0x9ce   :  { %v598_v2 = vadd.f32 %v1522_v12, %v597_v53 }
 0x9cf   :  { %v1266_v36 = vpop.eup %1265 }
 0x9d0   :  { %v666_v58 = vmul.f32 %v1266_v36, %v664_v57  ;;  %vm671_vm3 = vweird.f32 %v1266_v36  ;;  %v1186_v3 = vmul.f32 -1.442695, %v598_v2 }
 0x9d1   :  { %vm672_vm5 = vmor %vm670_vm4, %vm671_vm3 }
 0x9d2   :  { %v667_v43 = vsub.f32 1.0, %v666_v58  ;;  %1267 = vpow2.f32 %v1186_v3 }
 0x9d4   :  { %v668_v59 = vmul.f32 %v1266_v36, %v667_v43 }
 0x9d5   :  { %v599_v54 = vpop.f32.mrf.mxu0 }
 0x9d6   :  { %v669_v44 = vadd.f32 %v1266_v36, %v668_v59 }
 0x9d8   :  { %v673_v61 = vsel %vm672_vm5, %v1266_v36, %v669_v44  ;;  %v1268_v5 = vpop.eup %1267 }
 0x9d9   :  { %v678_v63 = vsel %vm675_vm6, %v677_v62, %v673_v61  ;;  %v604_v6 = vadd.f32 1.0, %v1268_v5 }
 0x9da   :  { %v691_v24 = vsub.f32 1.0, %v678_v63  ;;  %v697_v27 = vmul.f32 %v678_v63, %v1579_v34 }
 0x9db   :  { %1269 = vrcp.f32 %v604_v6  ;;  %v616_v17 = vand.u32 2147483648, %v604_v6  ;;  %vm610_vm10 = vweird.f32 %v604_v6  ;;  %v614_v18 = vand.u32 2147483647, %v604_v6 }
 0x9dd   :  { %v617_v21 = vor.u32 1.1754944e-38, %v616_v17  ;;  %vm615_vm12 = vcmp.eq.f32.partialorder %v614_v18, 8.507059e+37 }
 0x9e1   :  { %v1270_v8 = vpop.eup %1269 }
 0x9e2   :  { %v606_v9 = vmul.f32 %v1270_v8, %v604_v6  ;;  %vm611_vm9 = vweird.f32 %v1270_v8 }
 0x9e3   :  { %vm612_vm11 = vmor %vm610_vm10, %vm611_vm9 }
 0x9e4   :  { %v607_v11 = vsub.f32 1.0, %v606_v9 }
 0x9e6   :  { %v608_v14 = vmul.f32 %v1270_v8, %v607_v11 }
 0x9e8   :  { %v609_v15 = vadd.f32 %v1270_v8, %v608_v14 }
 0x9ea   :  { %v613_v19 = vsel %vm612_vm11, %v1270_v8, %v609_v15 }
 0x9eb   :  { %v618_v22 = vsel %vm615_vm12, %v617_v21, %v613_v19 }
 0x9ec   :  { %v631_v38 = vsub.f32 1.0, %v618_v22  ;;  %v637_v40 = vmul.f32 %v618_v22, %v1589_v47 }
 0xa18   :  { %v682_v0 = vpop.permute.xlu2 %681 }
 0xa19   :  { %v684_v1 = vmul.f32 %v682_v0, %v678_v63 }
 0xa1b   :  { %686 = vrot.lane.b32.xlu0 %v684_v1, %s1397_s29 }
 0xa23   :  { %621 = vrot.lane.b32.xlu0 %v598_v2, %s1402_s11 }
 0xa8d   :  { %v687_v10 = vpop.permute.xlu0 %686 }
 0xa8e   :  { %v689_v13 = vadd.f32 %v687_v10, %v660_v7 }
 0xa90   :  { %1271 = vtanh.f32 %v689_v13 }
 0xa95   :  { %v622_v20 = vpop.permute.xlu0 %621 }
 0xa96   :  { %v1272_v16 = vpop.eup %1271  ;;  %v624_v23 = vmul.f32 %v622_v20, %v618_v22 }
 0xa97   :  { %693 = vrot.lane.b32.xlu1 %v1272_v16, %s1403_s3 }
 0xa9f   :  { %626 = vrot.lane.b32.xlu1 %v624_v23, %s1397_s29 }
 0xb09   :  { %v694_v26 = vpop.permute.xlu1 %693 }
 0xb0a   :  { %v696_v28 = vmul.f32 %v694_v26, %v691_v24 }
 0xb0c   :  { %v1605_v29 = vadd.f32 %v697_v27, %v696_v28 }
 0xb0e   :  { %700 = vrot.lane.b32.xlu0 %v1605_v29, %s1403_s3  ;;  %v760_v30 = vpack.c.bf16 %v1605_v29, %v1605_v29 }
 0xb10   :  { %762 = vrot.lane.b32.xlu2 %v760_v30, %s1403_s3 }
 0xb11   :  { %v627_v31 = vpop.permute.xlu1 %626 }
 0xb12   :  { %v629_v32 = vadd.f32 %v627_v31, %v598_v2 }
 0xb14   :  { %1273 = vtanh.f32 %v629_v32 }
 0xb1a   :  { %v1274_v33 = vpop.eup %1273 }
 0xb1b   :  { %633 = vrot.lane.b32.xlu2 %v1274_v33, %s1403_s3 }
 0xb6a   :  { %v763_v37 = vpop.permute.xlu2 %762 }
 0xb6b   :  { %1191 = vmatmul.msk.bf16.vlgmr.msra.gmra.mxu2 %vm138_vm7, %v763_v37 }
 0xb75   :  { %v634_v34 = vpop.permute.xlu2 %633 }
 0xb76   :  { %v636_v39 = vmul.f32 %v634_v34, %v631_v38 }
 0xb78   :  { %v1615_v41 = vadd.f32 %v637_v40, %v636_v39  ;;  %v879_v40 = vld [vmem:[#allocation2 + $0xc] sm:$0x3] }
 0xb80   :  { %v701_v35 = vpop.permute.xlu0 %700 }
 0xb81   :  { %v703_v25 = vsel %vm138_vm7, %v701_v35, %v1615_v41 }
 0xb82   :  { %v704_v42 = vpack.c.bf16 %v703_v25, %v703_v25 }
 0xb84   :  { %1189 = vmatmul.msk.bf16.vlgmr.msra.gmra.mxu3 %vm224_vm8, %v704_v42 }
 0xbee   :  { %v776_v49 = vpop.f32.mrf.mxu2 }
 0xbef   :  { %v780_v50 = vadd.f32 %v776_v49, %v759_v46 }
 0xbf1   :  { %801 = vrot.lane.b32.xlu1 %v780_v50, %s1402_s11  ;;  %v1192_v7 = vmul.f32 -1.442695, %v780_v50 }
 0xbf3   :  { %1275 = vpow2.f32 %v1192_v7 }
 0xbf6   :  { %v778_v51 = vpop.f32.mrf.mxu2 }
 0xbf9   :  { %v1276_v52 = vpop.eup %1275 }
 0xbfa   :  { %v784_v53 = vadd.f32 1.0, %v1276_v52 }
 0xbfc   :  { %1277 = vrcp.f32 %v784_v53  ;;  %v796_v58 = vand.u32 2147483648, %v784_v53  ;;  %vm790_vm14 = vweird.f32 %v784_v53  ;;  %v794_v43 = vand.u32 2147483647, %v784_v53 }
 0xbfe   :  { %v797_v44 = vor.u32 1.1754944e-38, %v796_v58  ;;  %vm795_vm0 = vcmp.eq.f32.partialorder %v794_v43, 8.507059e+37 }
 0xc02   :  { %v1278_v54 = vpop.eup %1277 }
 0xc03   :  { %v786_v55 = vmul.f32 %v1278_v54, %v784_v53  ;;  %vm791_vm13 = vweird.f32 %v1278_v54 }
 0xc04   :  { %vm792_vm15 = vmor %vm790_vm14, %vm791_vm13 }
 0xc05   :  { %v787_v56 = vsub.f32 1.0, %v786_v55 }
 0xc07   :  { %v717_v4 = vpop.f32.mrf.mxu3  ;;  %v788_v57 = vmul.f32 %v1278_v54, %v787_v56 }
 0xc08   :  { %v718_v48 = vadd.f32 %v1522_v12, %v717_v4 }
 0xc09   :  { %v789_v36 = vadd.f32 %v1278_v54, %v788_v57 }
 0xc0a   :  { %741 = vrot.lane.b32.xlu1 %v718_v48, %s1402_s11  ;;  %v1190_v62 = vmul.f32 -1.442695, %v718_v48 }
 0xc0b   :  { %v793_v59 = vsel %vm792_vm15, %v1278_v54, %v789_v36 }
 0xc0c   :  { %v798_v60 = vsel %vm795_vm0, %v797_v44, %v793_v59  ;;  %1279 = vpow2.f32 %v1190_v62 }
 0xc0d   :  { %v811_v19 = vsub.f32 1.0, %v798_v60  ;;  %v817_v21 = vmul.f32 %v798_v60, %v1605_v29 }
 0xc0f   :  { %v719_v47 = vpop.f32.mrf.mxu3 }
 0xc12   :  { %v1280_v63 = vpop.eup %1279 }
 0xc13   :  { %v724_v0 = vadd.f32 1.0, %v1280_v63 }
 0xc15   :  { %1281 = vrcp.f32 %v724_v0  ;;  %v736_v11 = vand.u32 2147483648, %v724_v0  ;;  %vm730_vm2 = vweird.f32 %v724_v0  ;;  %v734_v13 = vand.u32 2147483647, %v724_v0 }
 0xc17   :  { %v737_v15 = vor.u32 1.1754944e-38, %v736_v11  ;;  %vm735_vm4 = vcmp.eq.f32.partialorder %v734_v13, 8.507059e+37 }
 0xc1b   :  { %v1282_v1 = vpop.eup %1281 }
 0xc1c   :  { %v726_v2 = vmul.f32 %v1282_v1, %v724_v0  ;;  %vm731_vm1 = vweird.f32 %v1282_v1 }
 0xc1d   :  { %vm732_vm3 = vmor %vm730_vm2, %vm731_vm1 }
 0xc1e   :  { %v727_v3 = vsub.f32 1.0, %v726_v2 }
 0xc20   :  { %v728_v8 = vmul.f32 %v1282_v1, %v727_v3 }
 0xc22   :  { %v729_v9 = vadd.f32 %v1282_v1, %v728_v8 }
 0xc24   :  { %v733_v14 = vsel %vm732_vm3, %v1282_v1, %v729_v9 }
 0xc25   :  { %v738_v17 = vsel %vm735_vm4, %v737_v15, %v733_v14 }
 0xc26   :  { %v751_v29 = vsub.f32 1.0, %v738_v17  ;;  %v757_v32 = vmul.f32 %v738_v17, %v1615_v41 }
 0xc63   :  { %v802_v45 = vpop.permute.xlu1 %801 }
 0xc64   :  { %v804_v61 = vmul.f32 %v802_v45, %v798_v60 }
 0xc66   :  { %806 = vrot.lane.b32.xlu2 %v804_v61, %s1397_s29 }
 0xc7c   :  { %v742_v16 = vpop.permute.xlu1 %741 }
 0xc7d   :  { %v744_v18 = vmul.f32 %v742_v16, %v738_v17 }
 0xcc0   :  { %v807_v5 = vpop.permute.xlu2 %806 }
 0xcc1   :  { %v809_v6 = vadd.f32 %v807_v5, %v780_v50 }
 0xcc3   :  { %1283 = vtanh.f32 %v809_v6 }
 0xcc9   :  { %v1284_v10 = vpop.eup %1283 }
 0xcca   :  { %813 = vrot.lane.b32.xlu0 %v1284_v10, %s1403_s3 }
 0xcd2   :  { %746 = vrot.lane.b32.xlu0 %v744_v18, %s1397_s29 }
 0xd3c   :  { %v814_v20 = vpop.permute.xlu0 %813 }
 0xd3d   :  { %v816_v22 = vmul.f32 %v814_v20, %v811_v19 }
 0xd3f   :  { %v1627_v23 = vadd.f32 %v817_v21, %v816_v22 }
 0xd41   :  { %v880_v24 = vpack.c.bf16 %v1627_v23, %v1627_v23 }
 0xd43   :  { %882 = vrot.lane.b32.xlu2 %v880_v24, %s1403_s3 }
 0xd44   :  { %v747_v26 = vpop.permute.xlu0 %746 }
 0xd45   :  { %v749_v27 = vadd.f32 %v747_v26, %v718_v48 }
 0xd47   :  { %1285 = vtanh.f32 %v749_v27 }
 0xd4b   :  { %820 = vrot.lane.b32.xlu2 %v1627_v23, %s1403_s3 }
 0xd4d   :  { %v1286_v28 = vpop.eup %1285 }
 0xd4e   :  { %753 = vrot.lane.b32.xlu1 %v1286_v28, %s1403_s3 }
 0xd9d   :  { %v883_v30 = vpop.permute.xlu2 %882 }
 0xd9e   :  { %1195 = vmatmul.msk.bf16.vlgmr.msrb.gmra.mxu1 %vm138_vm7, %v883_v30 }
 0xda5   :  { %v821_v34 = vpop.permute.xlu2 %820 }
 0xdc0   :  { %v754_v31 = vpop.permute.xlu1 %753 }
 0xdc1   :  { %v756_v33 = vmul.f32 %v754_v31, %v751_v29 }
 0xdc3   :  { %v1637_v37 = vadd.f32 %v757_v32, %v756_v33  ;;  %v999_v33 = vld [vmem:[#allocation2 + $0xe] sm:$0x3] }
 0xdc5   :  { %v823_v38 = vsel %vm138_vm7, %v821_v34, %v1637_v37 }
 0xdc6   :  { %v824_v39 = vpack.c.bf16 %v823_v38, %v823_v38 }
 0xdc8   :  { %1193 = vmatmul.msk.bf16.vlgmr.msrb.gmra.mxu0 %vm224_vm8, %v824_v39 }
 0xe1b   :  { %v896_v35 = vpop.f32.mrf.mxu1 }
 0xe1c   :  { %v900_v25 = vadd.f32 %v896_v35, %v879_v40 }
 0xe1e   :  { %921 = vrot.lane.b32.xlu0 %v900_v25, %s1402_s11  ;;  %v1196_v50 = vmul.f32 -1.442695, %v900_v25 }
 0xe20   :  { %1287 = vpow2.f32 %v1196_v50 }
 0xe23   :  { %v898_v42 = vpop.f32.mrf.mxu1 }
 0xe26   :  { %v1288_v51 = vpop.eup %1287 }
 0xe27   :  { %v904_v4 = vadd.f32 1.0, %v1288_v51 }
 0xe29   :  { %1289 = vrcp.f32 %v904_v4  ;;  %v916_v57 = vand.u32 2147483648, %v904_v4  ;;  %vm910_vm6 = vweird.f32 %v904_v4  ;;  %v914_v36 = vand.u32 2147483647, %v904_v4 }
 0xe2b   :  { %v917_v59 = vor.u32 1.1754944e-38, %v916_v57  ;;  %vm915_vm10 = vcmp.eq.f32.partialorder %v914_v36, 8.507059e+37 }
 0xe2f   :  { %v1290_v47 = vpop.eup %1289 }
 0xe30   :  { %v906_v7 = vmul.f32 %v1290_v47, %v904_v4  ;;  %vm911_vm5 = vweird.f32 %v1290_v47 }
 0xe31   :  { %vm912_vm9 = vmor %vm910_vm6, %vm911_vm5 }
 0xe32   :  { %v907_v53 = vsub.f32 1.0, %v906_v7 }
 0xe34   :  { %v908_v55 = vmul.f32 %v1290_v47, %v907_v53 }
 0xe36   :  { %v909_v56 = vadd.f32 %v1290_v47, %v908_v55 }
 0xe38   :  { %v913_v43 = vsel %vm912_vm9, %v1290_v47, %v909_v56 }
 0xe39   :  { %v918_v45 = vsel %vm915_vm10, %v917_v59, %v913_v43 }
 0xe3a   :  { %v931_v17 = vsub.f32 1.0, %v918_v45  ;;  %v937_v19 = vmul.f32 %v918_v45, %v1627_v23 }
 0xe45   :  { %v837_v46 = vpop.f32.mrf.mxu0 }
 0xe46   :  { %v838_v49 = vadd.f32 %v1522_v12, %v837_v46 }
 0xe48   :  { %861 = vrot.lane.b32.xlu2 %v838_v49, %s1402_s11  ;;  %v1194_v48 = vmul.f32 -1.442695, %v838_v49 }
 0xe4a   :  { %1291 = vpow2.f32 %v1194_v48 }
 0xe4d   :  { %v839_v41 = vpop.f32.mrf.mxu0 }
 0xe50   :  { %v1292_v52 = vpop.eup %1291 }
 0xe51   :  { %v844_v54 = vadd.f32 1.0, %v1292_v52 }
 0xe53   :  { %1293 = vrcp.f32 %v844_v54  ;;  %v856_v1 = vand.u32 2147483648, %v844_v54  ;;  %vm850_vm12 = vweird.f32 %v844_v54  ;;  %v854_v2 = vand.u32 2147483647, %v844_v54 }
 0xe55   :  { %v857_v5 = vor.u32 1.1754944e-38, %v856_v1  ;;  %vm855_vm14 = vcmp.eq.f32.partialorder %v854_v2, 8.507059e+37 }
 0xe59   :  { %v1294_v58 = vpop.eup %1293 }
 0xe5a   :  { %v846_v44 = vmul.f32 %v1294_v58, %v844_v54  ;;  %vm851_vm11 = vweird.f32 %v1294_v58 }
 0xe5b   :  { %vm852_vm13 = vmor %vm850_vm12, %vm851_vm11  ;;  %vm1123_vm11 = vcmask 254976  }
 0xe5c   :  { %v847_v62 = vsub.f32 1.0, %v846_v44 }
 0xe5e   :  { %v848_v63 = vmul.f32 %v1294_v58, %v847_v62 }
 0xe60   :  { %v849_v0 = vadd.f32 %v1294_v58, %v848_v63 }
 0xe62   :  { %v853_v3 = vsel %vm852_vm13, %v1294_v58, %v849_v0 }
 0xe63   :  { %v858_v8 = vsel %vm855_vm14, %v857_v5, %v853_v3 }
 0xe64   :  { %v871_v27 = vsub.f32 1.0, %v858_v8  ;;  %v877_v30 = vmul.f32 %v858_v8, %v1637_v37 }
 0xe90   :  { %v922_v60 = vpop.permute.xlu0 %921 }
 0xe91   :  { %v924_v61 = vmul.f32 %v922_v60, %v918_v45 }
 0xe93   :  { %926 = vrot.lane.b32.xlu1 %v924_v61, %s1397_s29 }
 0xea2   :  { %v862_v6 = vpop.permute.xlu2 %861 }
 0xea3   :  { %v864_v9 = vmul.f32 %v862_v6, %v858_v8 }
 0xea5   :  { %866 = vrot.lane.b32.xlu1 %v864_v9, %s1397_s29 }
 0xf05   :  { %v927_v10 = vpop.permute.xlu1 %926 }
 0xf06   :  { %v929_v11 = vadd.f32 %v927_v10, %v900_v25 }
 0xf08   :  { %1295 = vtanh.f32 %v929_v11 }
 0xf0e   :  { %v1296_v13 = vpop.eup %1295 }
 0xf0f   :  { %933 = vrot.lane.b32.xlu0 %v1296_v13, %s1403_s3 }
 0xf17   :  { %v867_v14 = vpop.permute.xlu1 %866 }
 0xf18   :  { %v869_v15 = vadd.f32 %v867_v14, %v838_v49 }
 0xf1a   :  { %1297 = vtanh.f32 %v869_v15 }
 0xf20   :  { %v1298_v16 = vpop.eup %1297 }
 0xf21   :  { %873 = vrot.lane.b32.xlu0 %v1298_v16, %s1403_s3 }
 0xf81   :  { %v934_v18 = vpop.permute.xlu0 %933 }
 0xf82   :  { %v936_v20 = vmul.f32 %v934_v18, %v931_v17 }
 0xf84   :  { %v1650_v21 = vadd.f32 %v937_v19, %v936_v20 }
 0xf86   :  { %940 = vrot.lane.b32.xlu1 %v1650_v21, %s1403_s3  ;;  %v1000_v22 = vpack.c.bf16 %v1650_v21, %v1650_v21 }
 0xf88   :  { %1002 = vrot.lane.b32.xlu2 %v1000_v22, %s1403_s3 }
 0xf93   :  { %v874_v26 = vpop.permute.xlu0 %873 }
 0xf94   :  { %v876_v28 = vmul.f32 %v874_v26, %v871_v27 }
 0xf96   :  { %v1659_v23 = vadd.f32 %v877_v30, %v876_v28 }
 0xfe2   :  { %v1003_v24 = vpop.permute.xlu2 %1002 }
 0xfe3   :  { %1199 = vmatmul.msk.bf16.vlgmr.msrb.gmra.mxu2 %vm138_vm7, %v1003_v24 }
 0xff8   :  { %v941_v29 = vpop.permute.xlu1 %940 }
 0xff9   :  { %v943_v31 = vsel %vm138_vm7, %v941_v29, %v1659_v23 }
 0xffa   :  { %v944_v32 = vpack.c.bf16 %v943_v31, %v943_v31 }
 0xffc   :  { %1197 = vmatmul.msk.bf16.vlgmr.msrb.gmra.mxu3 %vm224_vm8, %v944_v32 }
0x1066   :  { %v1016_v34 = vpop.f32.mrf.mxu2 }
0x1067   :  { %v1020_v38 = vadd.f32 %v1016_v34, %v999_v33 }
0x1069   :  { %1041 = vrot.lane.b32.xlu2 %v1020_v38, %s1402_s11  ;;  %v1200_v25 = vmul.f32 -1.442695, %v1020_v38 }
0x106b   :  { %1299 = vpow2.f32 %v1200_v25 }
0x106e   :  { %v1018_v39 = vpop.f32.mrf.mxu2 }
0x1071   :  { %v1300_v42 = vpop.eup %1299 }
0x1072   :  { %v1024_v46 = vadd.f32 1.0, %v1300_v42 }
0x1074   :  { %1301 = vrcp.f32 %v1024_v46  ;;  %v1036_v48 = vand.u32 2147483648, %v1024_v46  ;;  %vm1030_vm0 = vweird.f32 %v1024_v46  ;;  %v1034_v47 = vand.u32 2147483647, %v1024_v46 }
0x1076   :  { %vm1035_vm2 = vcmp.eq.f32.partialorder %v1034_v47, 8.507059e+37 }
0x107a   :  { %v1302_v49 = vpop.eup %1301 }
0x107b   :  { %v1026_v41 = vmul.f32 %v1302_v49, %v1024_v46  ;;  %vm1031_vm15 = vweird.f32 %v1302_v49 }
0x107c   :  { %vm1032_vm1 = vmor %vm1030_vm0, %vm1031_vm15 }
0x107d   :  { %v1027_v50 = vsub.f32 1.0, %v1026_v41 }
0x107f   :  { %v957_v40 = vpop.f32.mrf.mxu3  ;;  %v1028_v51 = vmul.f32 %v1302_v49, %v1027_v50 }
0x1080   :  { %v958_v35 = vadd.f32 %v1522_v12, %v957_v40  ;;  %v1037_v12 = vor.u32 1.1754944e-38, %v1036_v48 }
0x1081   :  { %v1029_v4 = vadd.f32 %v1302_v49, %v1028_v51 }
0x1082   :  { %981 = vrot.lane.b32.xlu0 %v958_v35, %s1402_s11  ;;  %v1198_v55 = vmul.f32 -1.442695, %v958_v35 }
0x1083   :  { %v1033_v7 = vsel %vm1032_vm1, %v1302_v49, %v1029_v4 }
0x1084   :  { %v1038_v53 = vsel %vm1035_vm2, %v1037_v12, %v1033_v7  ;;  %1303 = vpow2.f32 %v1198_v55 }
0x1085   :  { %v1051_v10 = vsub.f32 1.0, %v1038_v53  ;;  %v1057_v13 = vmul.f32 %v1038_v53, %v1650_v21  ;;  %v1317_v21 = vld [vmem:[%s1691_s5] ss:$0 sm:$0xff]  ;;  %s1404_s5 = smov [#allocation8]  }
0x1086   :  { %s1130_s16 = sshll.u32 %s1404_s5, 4  ;;  %s1131_s16 = int_to_ptr.vmem [resolvable:$true] %s1130_s16 }
0x1087   :  { %v959_v37 = vpop.f32.mrf.mxu3 }
0x108a   :  { %v1304_v56 = vpop.eup %1303 }
0x108b   :  { %v964_v57 = vadd.f32 1.0, %v1304_v56 }
0x108d   :  { %1305 = vrcp.f32 %v964_v57  ;;  %v976_v45 = vand.u32 2147483648, %v964_v57  ;;  %vm970_vm4 = vweird.f32 %v964_v57  ;;  %v974_v60 = vand.u32 2147483647, %v964_v57 }
0x108f   :  { %v977_v62 = vor.u32 1.1754944e-38, %v976_v45  ;;  %vm975_vm6 = vcmp.eq.f32.partialorder %v974_v60, 8.507059e+37 }
0x1093   :  { %v1306_v36 = vpop.eup %1305 }
0x1094   :  { %v966_v58 = vmul.f32 %v1306_v36, %v964_v57  ;;  %vm971_vm3 = vweird.f32 %v1306_v36 }
0x1095   :  { %vm972_vm5 = vmor %vm970_vm4, %vm971_vm3 }
0x1096   :  { %v967_v43 = vsub.f32 1.0, %v966_v58 }
0x1098   :  { %v968_v59 = vmul.f32 %v1306_v36, %v967_v43 }
0x109a   :  { %v969_v44 = vadd.f32 %v1306_v36, %v968_v59 }
0x109c   :  { %v973_v61 = vsel %vm972_vm5, %v1306_v36, %v969_v44 }
0x109d   :  { %v978_v0 = vsel %vm975_vm6, %v977_v62, %v973_v61 }
0x109e   :  { %v991_v17 = vsub.f32 1.0, %v978_v0  ;;  %v997_v19 = vmul.f32 %v978_v0, %v1659_v23 }
0x10c3   :  { %v1042_v52 = vpop.permute.xlu2 %1041 }
0x10c4   :  { %v1044_v54 = vmul.f32 %v1042_v52, %v1038_v53 }
0x10c6   :  { %1046 = vrot.lane.b32.xlu1 %v1044_v54, %s1397_s29 }
0x10f4   :  { %v982_v63 = vpop.permute.xlu0 %981 }
0x10f5   :  { %v984_v1 = vmul.f32 %v982_v63, %v978_v0 }
0x10f7   :  { %986 = vrot.lane.b32.xlu2 %v984_v1, %s1397_s29 }
0x1138   :  { %v1047_v2 = vpop.permute.xlu1 %1046 }
0x1139   :  { %v1049_v3 = vadd.f32 %v1047_v2, %v1020_v38 }
0x113b   :  { %1307 = vtanh.f32 %v1049_v3 }
0x1141   :  { %v1308_v5 = vpop.eup %1307 }
0x1142   :  { %1053 = vrot.lane.b32.xlu0 %v1308_v5, %s1403_s3 }
0x1151   :  { %v987_v6 = vpop.permute.xlu2 %986 }
0x1152   :  { %v989_v8 = vadd.f32 %v987_v6, %v958_v35 }
0x1154   :  { %1309 = vtanh.f32 %v989_v8 }
0x115a   :  { %v1310_v9 = vpop.eup %1309 }
0x115b   :  { %993 = vrot.lane.b32.xlu1 %v1310_v9, %s1403_s3 }
0x11b4   :  { %v1054_v11 = vpop.permute.xlu0 %1053 }
0x11b5   :  { %v1056_v14 = vmul.f32 %v1054_v11, %v1051_v10 }
0x11b7   :  { %v1058_v15 = vadd.f32 %v1057_v13, %v1056_v14 }
0x11b9   :  { %1060 = vrot.lane.b32.xlu2 %v1058_v15, %s1403_s3 }
0x11cd   :  { %v994_v16 = vpop.permute.xlu1 %993 }
0x11ce   :  { %v996_v18 = vmul.f32 %v994_v16, %v991_v17 }
0x11d0   :  { %v998_v20 = vadd.f32 %v997_v19, %v996_v18 }
0x1213   :  { %v1061_v22 = vpop.permute.xlu2 %1060 }
0x1214   :  { %v1063_v24 = vsel %vm138_vm7, %v1061_v22, %v998_v20 }
0x1215   :  { %v1064_v26 = vpack.c.bf16 %v1063_v24, %v1063_v24 }
0x1217   :  { %1201 = vmatmul.msk.bf16.vlgmr.msra.gmra.mxu0 %vm224_vm8, %v1064_v26 }
0x1294   :  { %v1077_v27 = vpop.f32.mrf.mxu0 }
0x1295   :  { %v1078_v28 = vadd.f32 %v1317_v21, %v1077_v27 }
0x1297   :  { %1101 = vrot.lane.b32.xlu0 %v1078_v28, %s1402_s11  ;;  %v1202_v29 = vmul.f32 -1.442695, %v1078_v28 }
0x1299   :  { %1311 = vpow2.f32 %v1202_v29 }
0x129c   :  { %v1079_v30 = vpop.f32.mrf.mxu0 }
0x129f   :  { %v1312_v31 = vpop.eup %1311 }
0x12a0   :  { %v1084_v23 = vadd.f32 1.0, %v1312_v31 }
0x12a2   :  { %1313 = vrcp.f32 %v1084_v23  ;;  %v1096_v40 = vand.u32 2147483648, %v1084_v23  ;;  %vm1090_vm8 = vweird.f32 %v1084_v23  ;;  %v1094_v35 = vand.u32 2147483647, %v1084_v23 }
0x12a4   :  { %v1097_v25 = vor.u32 1.1754944e-38, %v1096_v40  ;;  %vm1095_vm10 = vcmp.eq.f32.partialorder %v1094_v35, 8.507059e+37 }
0x12a8   :  { %v1314_v32 = vpop.eup %1313 }
0x12a9   :  { %v1086_v33 = vmul.f32 %v1314_v32, %v1084_v23  ;;  %vm1091_vm7 = vweird.f32 %v1314_v32 }
0x12aa   :  { %vm1092_vm9 = vmor %vm1090_vm8, %vm1091_vm7 }
0x12ab   :  { %v1087_v34 = vsub.f32 1.0, %v1086_v33 }
0x12ad   :  { %v1088_v38 = vmul.f32 %v1314_v32, %v1087_v34 }
0x12af   :  { %v1089_v39 = vadd.f32 %v1314_v32, %v1088_v38 }
0x12b1   :  { %v1093_v37 = vsel %vm1092_vm9, %v1314_v32, %v1089_v39 }
0x12b2   :  { %v1098_v46 = vsel %vm1095_vm10, %v1097_v25, %v1093_v37 }
0x12b3   :  { %v1111_v4 = vsub.f32 1.0, %v1098_v46  ;;  %v1117_v47 = vmul.f32 %v1098_v46, %v998_v20 }
0x1309   :  { %v1102_v42 = vpop.permute.xlu0 %1101 }
0x130a   :  { %v1104_v49 = vmul.f32 %v1102_v42, %v1098_v46 }
0x130c   :  { %1106 = vrot.lane.b32.xlu1 %v1104_v49, %s1397_s29 }
0x137e   :  { %v1107_v41 = vpop.permute.xlu1 %1106 }
0x137f   :  { %v1109_v50 = vadd.f32 %v1107_v41, %v1078_v28 }
0x1381   :  { %1315 = vtanh.f32 %v1109_v50 }
0x1387   :  { %v1316_v51 = vpop.eup %1315 }
0x1388   :  { %1113 = vrot.lane.b32.xlu2 %v1316_v51, %s1403_s3 }
0x13e2   :  { %v1114_v48 = vpop.permute.xlu2 %1113 }
0x13e3   :  { %v1116_v7 = vmul.f32 %v1114_v48, %v1111_v4 }
0x13e5   :  { %v1118_v12 = vadd.f32 %v1117_v47, %v1116_v7 }
0x13e7   :  { %1120 = vrot.lane.b32.xlu0 %v1118_v12, %s1403_s3 }
0x1459   :  { %v1121_v52 = vpop.permute.xlu0 %1120 }
0x145a   :  { %1124 = vst.msk [vmem:[#allocation8] sm:$0x3] %vm1123_vm11, %v1121_v52 }
0x145b   :  { %1135 = dma.vmem_to_hbm [thread:$0]  %s1131_s16, 32, %s1133_s19, [#allocation5]  }
0x145c   :  { %1394 = dma.done.wait [#allocation5], 32  }
0x145d   :  { %1395 = vsyncadd [#allocation5], 4294967264 }
0x145e   :  { %1140 = vsyncpa [#allocation4], 1 }
0x145f   :  { %1141 = vsyncpa [#allocation7], 1 }
0x1460   :  { %1142 = vsyncpa [#allocation5], 1 }

</bundles_post_ra>
